<compile_context>
chip_gen: v6e
topology: v6e:2x2x1
jax: 0.10.0
libtpu: 0.0.40
codegen_flags: <defaults>
</compile_context>

<pallas_src>
import functools

import jax
import jax.numpy as jnp
from jax import lax
from jax.experimental import pallas as pl
from jax.experimental.pallas import tpu as pltpu

# ---------------------------------------------------------------------------
# Synthetic backbone hyper-parameters
# ---------------------------------------------------------------------------
B = 2                                   # batch
T = 2                                   # video frames
C = 3                                   # channels
IMG = 16                                # H = W
PATCH = 8
N_SPATIAL = (IMG // PATCH) ** 2         # 4 patches / frame
N_TOK = T * N_SPATIAL                   # 8 tokens / clip -> B*N = 16 sublanes
PATCH_DIM = C * PATCH * PATCH           # 192
HIDDEN = 128                            # lane-dense hidden size
NUM_HEADS = 4
HEAD_DIM = HIDDEN // NUM_HEADS          # 32
MLP_DIM = 4 * HIDDEN                    # 512
NUM_CLASSES = 5
LANE = 128                              # padded logits width (lane-dense store)


# ---------------------------------------------------------------------------
# Single fused Pallas kernel: backbone -> mean-pool -> classifier
# ---------------------------------------------------------------------------
def _fused_forward_kernel(
    xp_ref, pos_ref, mask_ref,
    pw_ref, pb_ref,
    wqkv_ref, bqkv_ref, wo_ref, bo_ref,
    g1_ref, be1_ref, g2_ref, be2_ref,
    w1_ref, b1_ref, w2_ref, b2_ref,
    cw_ref, cb_ref,
    logits_ref, feats_ref,
    *, batch, tokens, num_heads,
):
    bn = batch * tokens
    d = pw_ref.shape[1]
    hd = d // num_heads
    scale = 1.0 / (hd ** 0.5)

    # --- patch embedding + positional embedding (one MXU matmul, in-kernel add)
    x = (jnp.dot(xp_ref[...], pw_ref[...], preferred_element_type=jnp.float32)
         + pb_ref[...] + pos_ref[...])                         # (BN, D)

    def layernorm(v, g, beta):
        mu = jnp.mean(v, axis=-1, keepdims=True)
        var = jnp.mean((v - mu) * (v - mu), axis=-1, keepdims=True)
        return (v - mu) * lax.rsqrt(var + 1e-5) * g + beta

    # --- pre-LN multi-head self-attention -----------------------------------
    xn = layernorm(x, g1_ref[...], be1_ref[...])
    # fused QKV: one (BN, D) @ (D, 3D) matmul, bias added once
    qkv = jnp.dot(xn, wqkv_ref[...], preferred_element_type=jnp.float32) + bqkv_ref[...]
    q = qkv[:, :d]
    k = qkv[:, d:2 * d]
    v = qkv[:, 2 * d:]

    # batch is fused onto the sublane axis, so the whole-batch score matmul
    # uses an additive block-diagonal mask to keep attention within each clip.
    neg_mask = mask_ref[...]                                   # (BN, BN)

    head_outs = []
    for h in range(num_heads):          # static python loop; 32-lane-aligned slices
        sl = slice(h * hd, (h + 1) * hd)
        s = jnp.dot(q[:, sl], k[:, sl].T, preferred_element_type=jnp.float32) * scale
        p = jax.nn.softmax(s + neg_mask, axis=-1)
        head_outs.append(jnp.dot(p, v[:, sl], preferred_element_type=jnp.float32))
    attn = jnp.concatenate(head_outs, axis=-1)                 # (BN, D)
    # single output projection for all heads
    x = x + jnp.dot(attn, wo_ref[...], preferred_element_type=jnp.float32) + bo_ref[...]

    # --- pre-LN MLP ----------------------------------------------------------
    xn2 = layernorm(x, g2_ref[...], be2_ref[...])
    hmid = jnp.dot(xn2, w1_ref[...], preferred_element_type=jnp.float32) + b1_ref[...]
    # tanh-approx GELU (maps to EUP); synthetic backbone has no PyTorch-parity
    # target, keep f32 elementwise math throughout (v5e friendly).
    hmid = jax.nn.gelu(hmid, approximate=True)
    x = x + jnp.dot(hmid, w2_ref[...], preferred_element_type=jnp.float32) + b2_ref[...]

    # --- last_hidden_state.mean(dim=1) ---------------------------------------
    feats = jnp.mean(x.reshape(batch, tokens, d), axis=1)      # (B, D)
    feats_ref[...] = feats

    # --- classifier (padded to 128 lanes -> lane-dense store) ----------------
    logits_ref[...] = (
        jnp.dot(feats, cw_ref[...], preferred_element_type=jnp.float32) + cb_ref[...]
    )


# ---------------------------------------------------------------------------
# Wrapper (glue only: patchify, constants, slice padded logits)
# ---------------------------------------------------------------------------
def _patchify(video):
    b, t, c, hh, ww = video.shape
    nh, nw = hh // PATCH, ww // PATCH
    x = video.reshape(b, t, c, nh, PATCH, nw, PATCH)
    x = x.transpose(0, 1, 3, 5, 2, 4, 6)                       # (B,T,nh,nw,C,P,P)
    return x.reshape(b * t * nh * nw, c * PATCH * PATCH)       # (B*N, C*P*P)


def video_classification_forward(video, params):
    b = video.shape[0]
    bn = b * N_TOK

    xp = _patchify(video)                                      # (BN, PATCH_DIM)
    pos_tiled = jnp.tile(params["pos"], (b, 1))                # (BN, HIDDEN)
    clip_id = jnp.arange(bn, dtype=jnp.int32) // N_TOK
    neg_mask = jnp.where(clip_id[:, None] == clip_id[None, :], 0.0, -1e30
                         ).astype(jnp.float32)                 # (BN, BN) additive mask

    inputs = (
        xp, pos_tiled, neg_mask,
        params["patch_w"], params["patch_b"],
        params["wqkv"], params["bqkv"], params["wo"], params["bo"],
        params["g1"], params["be1"], params["g2"], params["be2"],
        params["w1"], params["b1"], params["w2"], params["b2"],
        params["cls_w"], params["cls_b"],
    )

    logits_pad, feats = pl.pallas_call(
        functools.partial(
            _fused_forward_kernel, batch=b, tokens=N_TOK, num_heads=NUM_HEADS
        ),
        out_shape=(
            jax.ShapeDtypeStruct((b, LANE), jnp.float32),      # padded logits
            jax.ShapeDtypeStruct((b, HIDDEN), jnp.float32),    # pooled features
        ),
        in_specs=[
            pl.BlockSpec(memory_space=pltpu.MemorySpace.VMEM) for _ in inputs
        ],
        out_specs=(
            pl.BlockSpec(memory_space=pltpu.MemorySpace.VMEM),
            pl.BlockSpec(memory_space=pltpu.MemorySpace.VMEM),
        ),
    )(*inputs)

    logits = logits_pad[:, :NUM_CLASSES]
    # matches: return (self.classifier(outputs), outputs)
    return logits, feats


# ---------------------------------------------------------------------------
# Deterministic parameter initialization
# ---------------------------------------------------------------------------
def _dense(key, kin, kout):
    k1, k2 = jax.random.split(key)
    w = jax.random.normal(k1, (kin, kout), jnp.float32) * (1.0 / jnp.sqrt(kin))
    b = jax.random.normal(k2, (1, kout), jnp.float32) * 0.01
    return w, b


def init_params(key):
    ks = jax.random.split(key, 7)
    patch_w, patch_b = _dense(ks[0], PATCH_DIM, HIDDEN)
    pos = jax.random.normal(ks[1], (N_TOK, HIDDEN), jnp.float32) * 0.02
    wqkv, bqkv = _dense(ks[2], HIDDEN, 3 * HIDDEN)             # fused Wq|Wk|Wv
    wo, bo = _dense(ks[3], HIDDEN, HIDDEN)
    w1, b1 = _dense(ks[4], HIDDEN, MLP_DIM)
    w2, b2 = _dense(ks[5], MLP_DIM, HIDDEN)
    cw, cb = _dense(ks[6], HIDDEN, NUM_CLASSES)
    # pad classifier to 128 output lanes so the kernel's final store is lane-dense
    cls_w = jnp.zeros((HIDDEN, LANE), jnp.float32).at[:, :NUM_CLASSES].set(cw)
    cls_b = jnp.zeros((1, LANE), jnp.float32).at[:, :NUM_CLASSES].set(cb)
    return dict(
        patch_w=patch_w, patch_b=patch_b, pos=pos,
        wqkv=wqkv, bqkv=bqkv, wo=wo, bo=bo,
        g1=jnp.ones((1, HIDDEN), jnp.float32), be1=jnp.zeros((1, HIDDEN), jnp.float32),
        g2=jnp.ones((1, HIDDEN), jnp.float32), be2=jnp.zeros((1, HIDDEN), jnp.float32),
        w1=w1, b1=b1, w2=w2, b2=b2,
        cls_w=cls_w, cls_b=cls_b,
    )


if __name__ == "__main__":
    key = jax.random.PRNGKey(0)
    kx, kp = jax.random.split(key)
    video = jax.random.normal(kx, (B, T, C, IMG, IMG), jnp.float32)  # (B,T,C,H,W)
    params = init_params(kp)

    fwd = jax.jit(video_classification_forward)
    logits, feats = fwd(video, params)
    jax.block_until_ready((logits, feats))

    assert logits.shape == (B, NUM_CLASSES), logits.shape
    assert feats.shape == (B, HIDDEN), feats.shape
    assert bool(jnp.all(jnp.isfinite(logits))) and bool(jnp.all(jnp.isfinite(feats)))
    print("KERNEL_OK")
</pallas_src>

<mosaic_0001>
module attributes {stable_mosaic.version = 11 : i64} {
  func.func @_fused_forward_kernel(%arg0: memref<16x192xf32, #tpu.memory_space<vmem>>, %arg1: memref<16x128xf32, #tpu.memory_space<vmem>>, %arg2: memref<16x16xf32, #tpu.memory_space<vmem>>, %arg3: memref<192x128xf32, #tpu.memory_space<vmem>>, %arg4: memref<1x128xf32, #tpu.memory_space<vmem>>, %arg5: memref<128x384xf32, #tpu.memory_space<vmem>>, %arg6: memref<1x384xf32, #tpu.memory_space<vmem>>, %arg7: memref<128x128xf32, #tpu.memory_space<vmem>>, %arg8: memref<1x128xf32, #tpu.memory_space<vmem>>, %arg9: memref<1x128xf32, #tpu.memory_space<vmem>>, %arg10: memref<1x128xf32, #tpu.memory_space<vmem>>, %arg11: memref<1x128xf32, #tpu.memory_space<vmem>>, %arg12: memref<1x128xf32, #tpu.memory_space<vmem>>, %arg13: memref<128x512xf32, #tpu.memory_space<vmem>>, %arg14: memref<1x512xf32, #tpu.memory_space<vmem>>, %arg15: memref<512x128xf32, #tpu.memory_space<vmem>>, %arg16: memref<1x128xf32, #tpu.memory_space<vmem>>, %arg17: memref<128x128xf32, #tpu.memory_space<vmem>>, %arg18: memref<1x128xf32, #tpu.memory_space<vmem>>, %arg19: memref<2x128xf32, #tpu.memory_space<vmem>>, %arg20: memref<2x128xf32, #tpu.memory_space<vmem>>) attributes {dimension_semantics = [], scalar_prefetch = 0 : i64, scratch_operands = 0 : i64, tpu.core_type = #tpu.core_type<tc>} {
    %c0 = arith.constant 0 : index
    %c0_0 = arith.constant 0 : index
    %0 = vector.load %arg0[%c0, %c0_0] : memref<16x192xf32, #tpu.memory_space<vmem>>, vector<16x192xf32>
    %c0_1 = arith.constant 0 : index
    %c0_2 = arith.constant 0 : index
    %1 = vector.load %arg3[%c0_1, %c0_2] : memref<192x128xf32, #tpu.memory_space<vmem>>, vector<192x128xf32>
    %cst = arith.constant dense<0.000000e+00> : vector<16x128xf32>
    %2 = tpu.matmul %0, %1, %cst {dimension_numbers = #tpu.dot_dimension_numbers<[1], [0], [0], [1], [0, 0, 1, 1], [], []>} : vector<16x192xf32>, vector<192x128xf32>, vector<16x128xf32> -> vector<16x128xf32>
    %c0_3 = arith.constant 0 : index
    %c0_4 = arith.constant 0 : index
    %3 = vector.load %arg4[%c0_3, %c0_4] : memref<1x128xf32, #tpu.memory_space<vmem>>, vector<1x128xf32>
    %4 = vector.broadcast %3 : vector<1x128xf32> to vector<16x128xf32>
    %5 = arith.addf %2, %4 : vector<16x128xf32>
    %c0_5 = arith.constant 0 : index
    %c0_6 = arith.constant 0 : index
    %6 = vector.load %arg1[%c0_5, %c0_6] : memref<16x128xf32, #tpu.memory_space<vmem>>, vector<16x128xf32>
    %7 = arith.addf %5, %6 : vector<16x128xf32>
    %c0_7 = arith.constant 0 : index
    %c0_8 = arith.constant 0 : index
    %8 = vector.load %arg9[%c0_7, %c0_8] : memref<1x128xf32, #tpu.memory_space<vmem>>, vector<1x128xf32>
    %c0_9 = arith.constant 0 : index
    %c0_10 = arith.constant 0 : index
    %9 = vector.load %arg10[%c0_9, %c0_10] : memref<1x128xf32, #tpu.memory_space<vmem>>, vector<1x128xf32>
    %cst_11 = arith.constant dense<0.000000e+00> : vector<16xf32>
    %10 = vector.multi_reduction <add>, %7, %cst_11 [1] : vector<16x128xf32> to vector<16xf32>
    %11 = vector.shape_cast %10 : vector<16xf32> to vector<16x1xf32>
    %cst_12 = arith.constant 1.280000e+02 : f32
    %12 = vector.broadcast %cst_12 : f32 to vector<16x1xf32>
    %13 = arith.divf %11, %12 : vector<16x1xf32>
    %14 = vector.broadcast %13 : vector<16x1xf32> to vector<16x128xf32>
    %15 = arith.subf %7, %14 : vector<16x128xf32>
    %16 = vector.broadcast %13 : vector<16x1xf32> to vector<16x128xf32>
    %17 = arith.subf %7, %16 : vector<16x128xf32>
    %18 = arith.mulf %15, %17 : vector<16x128xf32>
    %cst_13 = arith.constant dense<0.000000e+00> : vector<16xf32>
    %19 = vector.multi_reduction <add>, %18, %cst_13 [1] : vector<16x128xf32> to vector<16xf32>
    %20 = vector.shape_cast %19 : vector<16xf32> to vector<16x1xf32>
    %cst_14 = arith.constant 1.280000e+02 : f32
    %21 = vector.broadcast %cst_14 : f32 to vector<16x1xf32>
    %22 = arith.divf %20, %21 : vector<16x1xf32>
    %23 = vector.broadcast %13 : vector<16x1xf32> to vector<16x128xf32>
    %24 = arith.subf %7, %23 : vector<16x128xf32>
    %cst_15 = arith.constant 9.99999974E-6 : f32
    %25 = vector.broadcast %cst_15 : f32 to vector<16x1xf32>
    %26 = arith.addf %22, %25 : vector<16x1xf32>
    %27 = math.rsqrt %26 : vector<16x1xf32>
    %28 = vector.broadcast %27 : vector<16x1xf32> to vector<16x128xf32>
    %29 = arith.mulf %24, %28 : vector<16x128xf32>
    %30 = vector.broadcast %8 : vector<1x128xf32> to vector<16x128xf32>
    %31 = arith.mulf %29, %30 : vector<16x128xf32>
    %32 = vector.broadcast %9 : vector<1x128xf32> to vector<16x128xf32>
    %33 = arith.addf %31, %32 : vector<16x128xf32>
    %c0_16 = arith.constant 0 : index
    %c0_17 = arith.constant 0 : index
    %34 = vector.load %arg5[%c0_16, %c0_17] : memref<128x384xf32, #tpu.memory_space<vmem>>, vector<128x384xf32>
    %cst_18 = arith.constant dense<0.000000e+00> : vector<16x384xf32>
    %35 = tpu.matmul %33, %34, %cst_18 {dimension_numbers = #tpu.dot_dimension_numbers<[1], [0], [0], [1], [0, 0, 1, 1], [], []>} : vector<16x128xf32>, vector<128x384xf32>, vector<16x384xf32> -> vector<16x384xf32>
    %c0_19 = arith.constant 0 : index
    %c0_20 = arith.constant 0 : index
    %36 = vector.load %arg6[%c0_19, %c0_20] : memref<1x384xf32, #tpu.memory_space<vmem>>, vector<1x384xf32>
    %37 = vector.broadcast %36 : vector<1x384xf32> to vector<16x384xf32>
    %38 = arith.addf %35, %37 : vector<16x384xf32>
    %39 = vector.extract_strided_slice %38 {offsets = [0, 0], sizes = [16, 128], strides = [1, 1]} : vector<16x384xf32> to vector<16x128xf32>
    %40 = vector.extract_strided_slice %38 {offsets = [0, 128], sizes = [16, 128], strides = [1, 1]} : vector<16x384xf32> to vector<16x128xf32>
    %41 = vector.extract_strided_slice %38 {offsets = [0, 256], sizes = [16, 128], strides = [1, 1]} : vector<16x384xf32> to vector<16x128xf32>
    %c0_21 = arith.constant 0 : index
    %c0_22 = arith.constant 0 : index
    %42 = vector.load %arg2[%c0_21, %c0_22] : memref<16x16xf32, #tpu.memory_space<vmem>>, vector<16x16xf32>
    %43 = vector.extract_strided_slice %39 {offsets = [0, 0], sizes = [16, 32], strides = [1, 1]} : vector<16x128xf32> to vector<16x32xf32>
    %44 = vector.extract_strided_slice %40 {offsets = [0, 0], sizes = [16, 32], strides = [1, 1]} : vector<16x128xf32> to vector<16x32xf32>
    %45 = tpu.transpose %44, [1, 0] : vector<16x32xf32> -> vector<32x16xf32>
    %cst_23 = arith.constant dense<0.000000e+00> : vector<16x16xf32>
    %46 = tpu.matmul %43, %45, %cst_23 {dimension_numbers = #tpu.dot_dimension_numbers<[1], [0], [0], [1], [0, 0, 1, 1], [], []>} : vector<16x32xf32>, vector<32x16xf32>, vector<16x16xf32> -> vector<16x16xf32>
    %cst_24 = arith.constant 0.176776692 : f32
    %47 = vector.broadcast %cst_24 : f32 to vector<16x16xf32>
    %48 = arith.mulf %46, %47 : vector<16x16xf32>
    %49 = arith.addf %48, %42 : vector<16x16xf32>
    %cst_25 = arith.constant dense<0xFF800000> : vector<16xf32>
    %50 = vector.multi_reduction <maximumf>, %49, %cst_25 [1] : vector<16x16xf32> to vector<16xf32>
    %cst_26 = arith.constant 0xFF800000 : f32
    %51 = vector.broadcast %cst_26 : f32 to vector<16xf32>
    %52 = arith.maximumf %51, %50 : vector<16xf32>
    %53 = vector.shape_cast %52 : vector<16xf32> to vector<16x1xf32>
    %54 = vector.broadcast %53 : vector<16x1xf32> to vector<16x16xf32>
    %55 = arith.subf %49, %54 : vector<16x16xf32>
    %56 = math.exp %55 : vector<16x16xf32>
    %cst_27 = arith.constant dense<0.000000e+00> : vector<16xf32>
    %57 = vector.multi_reduction <add>, %56, %cst_27 [1] : vector<16x16xf32> to vector<16xf32>
    %58 = vector.shape_cast %57 : vector<16xf32> to vector<16x1xf32>
    %59 = vector.broadcast %58 : vector<16x1xf32> to vector<16x16xf32>
    %60 = arith.divf %56, %59 : vector<16x16xf32>
    %61 = vector.extract_strided_slice %41 {offsets = [0, 0], sizes = [16, 32], strides = [1, 1]} : vector<16x128xf32> to vector<16x32xf32>
    %cst_28 = arith.constant dense<0.000000e+00> : vector<16x32xf32>
    %62 = tpu.matmul %60, %61, %cst_28 {dimension_numbers = #tpu.dot_dimension_numbers<[1], [0], [0], [1], [0, 0, 1, 1], [], []>} : vector<16x16xf32>, vector<16x32xf32>, vector<16x32xf32> -> vector<16x32xf32>
    %63 = vector.extract_strided_slice %39 {offsets = [0, 32], sizes = [16, 32], strides = [1, 1]} : vector<16x128xf32> to vector<16x32xf32>
    %64 = vector.extract_strided_slice %40 {offsets = [0, 32], sizes = [16, 32], strides = [1, 1]} : vector<16x128xf32> to vector<16x32xf32>
    %65 = tpu.transpose %64, [1, 0] : vector<16x32xf32> -> vector<32x16xf32>
    %cst_29 = arith.constant dense<0.000000e+00> : vector<16x16xf32>
    %66 = tpu.matmul %63, %65, %cst_29 {dimension_numbers = #tpu.dot_dimension_numbers<[1], [0], [0], [1], [0, 0, 1, 1], [], []>} : vector<16x32xf32>, vector<32x16xf32>, vector<16x16xf32> -> vector<16x16xf32>
    %cst_30 = arith.constant 0.176776692 : f32
    %67 = vector.broadcast %cst_30 : f32 to vector<16x16xf32>
    %68 = arith.mulf %66, %67 : vector<16x16xf32>
    %69 = arith.addf %68, %42 : vector<16x16xf32>
    %cst_31 = arith.constant dense<0xFF800000> : vector<16xf32>
    %70 = vector.multi_reduction <maximumf>, %69, %cst_31 [1] : vector<16x16xf32> to vector<16xf32>
    %cst_32 = arith.constant 0xFF800000 : f32
    %71 = vector.broadcast %cst_32 : f32 to vector<16xf32>
    %72 = arith.maximumf %71, %70 : vector<16xf32>
    %73 = vector.shape_cast %72 : vector<16xf32> to vector<16x1xf32>
    %74 = vector.broadcast %73 : vector<16x1xf32> to vector<16x16xf32>
    %75 = arith.subf %69, %74 : vector<16x16xf32>
    %76 = math.exp %75 : vector<16x16xf32>
    %cst_33 = arith.constant dense<0.000000e+00> : vector<16xf32>
    %77 = vector.multi_reduction <add>, %76, %cst_33 [1] : vector<16x16xf32> to vector<16xf32>
    %78 = vector.shape_cast %77 : vector<16xf32> to vector<16x1xf32>
    %79 = vector.broadcast %78 : vector<16x1xf32> to vector<16x16xf32>
    %80 = arith.divf %76, %79 : vector<16x16xf32>
    %81 = vector.extract_strided_slice %41 {offsets = [0, 32], sizes = [16, 32], strides = [1, 1]} : vector<16x128xf32> to vector<16x32xf32>
    %cst_34 = arith.constant dense<0.000000e+00> : vector<16x32xf32>
    %82 = tpu.matmul %80, %81, %cst_34 {dimension_numbers = #tpu.dot_dimension_numbers<[1], [0], [0], [1], [0, 0, 1, 1], [], []>} : vector<16x16xf32>, vector<16x32xf32>, vector<16x32xf32> -> vector<16x32xf32>
    %83 = vector.extract_strided_slice %39 {offsets = [0, 64], sizes = [16, 32], strides = [1, 1]} : vector<16x128xf32> to vector<16x32xf32>
    %84 = vector.extract_strided_slice %40 {offsets = [0, 64], sizes = [16, 32], strides = [1, 1]} : vector<16x128xf32> to vector<16x32xf32>
    %85 = tpu.transpose %84, [1, 0] : vector<16x32xf32> -> vector<32x16xf32>
    %cst_35 = arith.constant dense<0.000000e+00> : vector<16x16xf32>
    %86 = tpu.matmul %83, %85, %cst_35 {dimension_numbers = #tpu.dot_dimension_numbers<[1], [0], [0], [1], [0, 0, 1, 1], [], []>} : vector<16x32xf32>, vector<32x16xf32>, vector<16x16xf32> -> vector<16x16xf32>
    %cst_36 = arith.constant 0.176776692 : f32
    %87 = vector.broadcast %cst_36 : f32 to vector<16x16xf32>
    %88 = arith.mulf %86, %87 : vector<16x16xf32>
    %89 = arith.addf %88, %42 : vector<16x16xf32>
    %cst_37 = arith.constant dense<0xFF800000> : vector<16xf32>
    %90 = vector.multi_reduction <maximumf>, %89, %cst_37 [1] : vector<16x16xf32> to vector<16xf32>
    %cst_38 = arith.constant 0xFF800000 : f32
    %91 = vector.broadcast %cst_38 : f32 to vector<16xf32>
    %92 = arith.maximumf %91, %90 : vector<16xf32>
    %93 = vector.shape_cast %92 : vector<16xf32> to vector<16x1xf32>
    %94 = vector.broadcast %93 : vector<16x1xf32> to vector<16x16xf32>
    %95 = arith.subf %89, %94 : vector<16x16xf32>
    %96 = math.exp %95 : vector<16x16xf32>
    %cst_39 = arith.constant dense<0.000000e+00> : vector<16xf32>
    %97 = vector.multi_reduction <add>, %96, %cst_39 [1] : vector<16x16xf32> to vector<16xf32>
    %98 = vector.shape_cast %97 : vector<16xf32> to vector<16x1xf32>
    %99 = vector.broadcast %98 : vector<16x1xf32> to vector<16x16xf32>
    %100 = arith.divf %96, %99 : vector<16x16xf32>
    %101 = vector.extract_strided_slice %41 {offsets = [0, 64], sizes = [16, 32], strides = [1, 1]} : vector<16x128xf32> to vector<16x32xf32>
    %cst_40 = arith.constant dense<0.000000e+00> : vector<16x32xf32>
    %102 = tpu.matmul %100, %101, %cst_40 {dimension_numbers = #tpu.dot_dimension_numbers<[1], [0], [0], [1], [0, 0, 1, 1], [], []>} : vector<16x16xf32>, vector<16x32xf32>, vector<16x32xf32> -> vector<16x32xf32>
    %103 = vector.extract_strided_slice %39 {offsets = [0, 96], sizes = [16, 32], strides = [1, 1]} : vector<16x128xf32> to vector<16x32xf32>
    %104 = vector.extract_strided_slice %40 {offsets = [0, 96], sizes = [16, 32], strides = [1, 1]} : vector<16x128xf32> to vector<16x32xf32>
    %105 = tpu.transpose %104, [1, 0] : vector<16x32xf32> -> vector<32x16xf32>
    %cst_41 = arith.constant dense<0.000000e+00> : vector<16x16xf32>
    %106 = tpu.matmul %103, %105, %cst_41 {dimension_numbers = #tpu.dot_dimension_numbers<[1], [0], [0], [1], [0, 0, 1, 1], [], []>} : vector<16x32xf32>, vector<32x16xf32>, vector<16x16xf32> -> vector<16x16xf32>
    %cst_42 = arith.constant 0.176776692 : f32
    %107 = vector.broadcast %cst_42 : f32 to vector<16x16xf32>
    %108 = arith.mulf %106, %107 : vector<16x16xf32>
    %109 = arith.addf %108, %42 : vector<16x16xf32>
    %cst_43 = arith.constant dense<0xFF800000> : vector<16xf32>
    %110 = vector.multi_reduction <maximumf>, %109, %cst_43 [1] : vector<16x16xf32> to vector<16xf32>
    %cst_44 = arith.constant 0xFF800000 : f32
    %111 = vector.broadcast %cst_44 : f32 to vector<16xf32>
    %112 = arith.maximumf %111, %110 : vector<16xf32>
    %113 = vector.shape_cast %112 : vector<16xf32> to vector<16x1xf32>
    %114 = vector.broadcast %113 : vector<16x1xf32> to vector<16x16xf32>
    %115 = arith.subf %109, %114 : vector<16x16xf32>
    %116 = math.exp %115 : vector<16x16xf32>
    %cst_45 = arith.constant dense<0.000000e+00> : vector<16xf32>
    %117 = vector.multi_reduction <add>, %116, %cst_45 [1] : vector<16x16xf32> to vector<16xf32>
    %118 = vector.shape_cast %117 : vector<16xf32> to vector<16x1xf32>
    %119 = vector.broadcast %118 : vector<16x1xf32> to vector<16x16xf32>
    %120 = arith.divf %116, %119 : vector<16x16xf32>
    %121 = vector.extract_strided_slice %41 {offsets = [0, 96], sizes = [16, 32], strides = [1, 1]} : vector<16x128xf32> to vector<16x32xf32>
    %cst_46 = arith.constant dense<0.000000e+00> : vector<16x32xf32>
    %122 = tpu.matmul %120, %121, %cst_46 {dimension_numbers = #tpu.dot_dimension_numbers<[1], [0], [0], [1], [0, 0, 1, 1], [], []>} : vector<16x16xf32>, vector<16x32xf32>, vector<16x32xf32> -> vector<16x32xf32>
    %123 = tpu.concatenate %62, %82, %102, %122 in 1 : vector<16x32xf32>, vector<16x32xf32>, vector<16x32xf32>, vector<16x32xf32> -> vector<16x128xf32>
    %c0_47 = arith.constant 0 : index
    %c0_48 = arith.constant 0 : index
    %124 = vector.load %arg7[%c0_47, %c0_48] : memref<128x128xf32, #tpu.memory_space<vmem>>, vector<128x128xf32>
    %cst_49 = arith.constant dense<0.000000e+00> : vector<16x128xf32>
    %125 = tpu.matmul %123, %124, %cst_49 {dimension_numbers = #tpu.dot_dimension_numbers<[1], [0], [0], [1], [0, 0, 1, 1], [], []>} : vector<16x128xf32>, vector<128x128xf32>, vector<16x128xf32> -> vector<16x128xf32>
    %126 = arith.addf %7, %125 : vector<16x128xf32>
    %c0_50 = arith.constant 0 : index
    %c0_51 = arith.constant 0 : index
    %127 = vector.load %arg8[%c0_50, %c0_51] : memref<1x128xf32, #tpu.memory_space<vmem>>, vector<1x128xf32>
    %128 = vector.broadcast %127 : vector<1x128xf32> to vector<16x128xf32>
    %129 = arith.addf %126, %128 : vector<16x128xf32>
    %c0_52 = arith.constant 0 : index
    %c0_53 = arith.constant 0 : index
    %130 = vector.load %arg11[%c0_52, %c0_53] : memref<1x128xf32, #tpu.memory_space<vmem>>, vector<1x128xf32>
    %c0_54 = arith.constant 0 : index
    %c0_55 = arith.constant 0 : index
    %131 = vector.load %arg12[%c0_54, %c0_55] : memref<1x128xf32, #tpu.memory_space<vmem>>, vector<1x128xf32>
    %cst_56 = arith.constant dense<0.000000e+00> : vector<16xf32>
    %132 = vector.multi_reduction <add>, %129, %cst_56 [1] : vector<16x128xf32> to vector<16xf32>
    %133 = vector.shape_cast %132 : vector<16xf32> to vector<16x1xf32>
    %cst_57 = arith.constant 1.280000e+02 : f32
    %134 = vector.broadcast %cst_57 : f32 to vector<16x1xf32>
    %135 = arith.divf %133, %134 : vector<16x1xf32>
    %136 = vector.broadcast %135 : vector<16x1xf32> to vector<16x128xf32>
    %137 = arith.subf %129, %136 : vector<16x128xf32>
    %138 = vector.broadcast %135 : vector<16x1xf32> to vector<16x128xf32>
    %139 = arith.subf %129, %138 : vector<16x128xf32>
    %140 = arith.mulf %137, %139 : vector<16x128xf32>
    %cst_58 = arith.constant dense<0.000000e+00> : vector<16xf32>
    %141 = vector.multi_reduction <add>, %140, %cst_58 [1] : vector<16x128xf32> to vector<16xf32>
    %142 = vector.shape_cast %141 : vector<16xf32> to vector<16x1xf32>
    %cst_59 = arith.constant 1.280000e+02 : f32
    %143 = vector.broadcast %cst_59 : f32 to vector<16x1xf32>
    %144 = arith.divf %142, %143 : vector<16x1xf32>
    %145 = vector.broadcast %135 : vector<16x1xf32> to vector<16x128xf32>
    %146 = arith.subf %129, %145 : vector<16x128xf32>
    %cst_60 = arith.constant 9.99999974E-6 : f32
    %147 = vector.broadcast %cst_60 : f32 to vector<16x1xf32>
    %148 = arith.addf %144, %147 : vector<16x1xf32>
    %149 = math.rsqrt %148 : vector<16x1xf32>
    %150 = vector.broadcast %149 : vector<16x1xf32> to vector<16x128xf32>
    %151 = arith.mulf %146, %150 : vector<16x128xf32>
    %152 = vector.broadcast %130 : vector<1x128xf32> to vector<16x128xf32>
    %153 = arith.mulf %151, %152 : vector<16x128xf32>
    %154 = vector.broadcast %131 : vector<1x128xf32> to vector<16x128xf32>
    %155 = arith.addf %153, %154 : vector<16x128xf32>
    %c0_61 = arith.constant 0 : index
    %c0_62 = arith.constant 0 : index
    %156 = vector.load %arg13[%c0_61, %c0_62] : memref<128x512xf32, #tpu.memory_space<vmem>>, vector<128x512xf32>
    %cst_63 = arith.constant dense<0.000000e+00> : vector<16x512xf32>
    %157 = tpu.matmul %155, %156, %cst_63 {dimension_numbers = #tpu.dot_dimension_numbers<[1], [0], [0], [1], [0, 0, 1, 1], [], []>} : vector<16x128xf32>, vector<128x512xf32>, vector<16x512xf32> -> vector<16x512xf32>
    %c0_64 = arith.constant 0 : index
    %c0_65 = arith.constant 0 : index
    %158 = vector.load %arg14[%c0_64, %c0_65] : memref<1x512xf32, #tpu.memory_space<vmem>>, vector<1x512xf32>
    %159 = vector.broadcast %158 : vector<1x512xf32> to vector<16x512xf32>
    %160 = arith.addf %157, %159 : vector<16x512xf32>
    %161 = arith.mulf %160, %160 : vector<16x512xf32>
    %162 = arith.mulf %160, %161 : vector<16x512xf32>
    %cst_66 = arith.constant 4.471500e-02 : f32
    %163 = vector.broadcast %cst_66 : f32 to vector<16x512xf32>
    %164 = arith.mulf %163, %162 : vector<16x512xf32>
    %165 = arith.addf %160, %164 : vector<16x512xf32>
    %cst_67 = arith.constant 0.797884583 : f32
    %166 = vector.broadcast %cst_67 : f32 to vector<16x512xf32>
    %167 = arith.mulf %166, %165 : vector<16x512xf32>
    %168 = math.tanh %167 : vector<16x512xf32>
    %cst_68 = arith.constant 1.000000e+00 : f32
    %169 = vector.broadcast %cst_68 : f32 to vector<16x512xf32>
    %170 = arith.addf %169, %168 : vector<16x512xf32>
    %cst_69 = arith.constant 5.000000e-01 : f32
    %171 = vector.broadcast %cst_69 : f32 to vector<16x512xf32>
    %172 = arith.mulf %171, %170 : vector<16x512xf32>
    %173 = arith.mulf %160, %172 : vector<16x512xf32>
    %c0_70 = arith.constant 0 : index
    %c0_71 = arith.constant 0 : index
    %174 = vector.load %arg15[%c0_70, %c0_71] : memref<512x128xf32, #tpu.memory_space<vmem>>, vector<512x128xf32>
    %cst_72 = arith.constant dense<0.000000e+00> : vector<16x128xf32>
    %175 = tpu.matmul %173, %174, %cst_72 {dimension_numbers = #tpu.dot_dimension_numbers<[1], [0], [0], [1], [0, 0, 1, 1], [], []>} : vector<16x512xf32>, vector<512x128xf32>, vector<16x128xf32> -> vector<16x128xf32>
    %176 = arith.addf %129, %175 : vector<16x128xf32>
    %c0_73 = arith.constant 0 : index
    %c0_74 = arith.constant 0 : index
    %177 = vector.load %arg16[%c0_73, %c0_74] : memref<1x128xf32, #tpu.memory_space<vmem>>, vector<1x128xf32>
    %178 = vector.broadcast %177 : vector<1x128xf32> to vector<16x128xf32>
    %179 = arith.addf %176, %178 : vector<16x128xf32>
    %180 = vector.shape_cast %179 : vector<16x128xf32> to vector<2x8x128xf32>
    %cst_75 = arith.constant dense<0.000000e+00> : vector<2x128xf32>
    %181 = vector.multi_reduction <add>, %180, %cst_75 [1] : vector<2x8x128xf32> to vector<2x128xf32>
    %cst_76 = arith.constant 8.000000e+00 : f32
    %182 = vector.broadcast %cst_76 : f32 to vector<2x128xf32>
    %183 = arith.divf %181, %182 : vector<2x128xf32>
    %c0_77 = arith.constant 0 : index
    %c0_78 = arith.constant 0 : index
    %184 = vector.load %arg20[%c0_77, %c0_78] : memref<2x128xf32, #tpu.memory_space<vmem>>, vector<2x128xf32>
    tpu.vector_store %arg20[%c0_77, %c0_78], %183 {strides = array<i32>} : memref<2x128xf32, #tpu.memory_space<vmem>>, vector<2x128xf32>,
    %c0_79 = arith.constant 0 : index
    %c0_80 = arith.constant 0 : index
    %185 = vector.load %arg17[%c0_79, %c0_80] : memref<128x128xf32, #tpu.memory_space<vmem>>, vector<128x128xf32>
    %cst_81 = arith.constant dense<0.000000e+00> : vector<2x128xf32>
    %186 = tpu.matmul %183, %185, %cst_81 {dimension_numbers = #tpu.dot_dimension_numbers<[1], [0], [0], [1], [0, 0, 1, 1], [], []>} : vector<2x128xf32>, vector<128x128xf32>, vector<2x128xf32> -> vector<2x128xf32>
    %c0_82 = arith.constant 0 : index
    %c0_83 = arith.constant 0 : index
    %187 = vector.load %arg18[%c0_82, %c0_83] : memref<1x128xf32, #tpu.memory_space<vmem>>, vector<1x128xf32>
    %188 = vector.broadcast %187 : vector<1x128xf32> to vector<2x128xf32>
    %189 = arith.addf %186, %188 : vector<2x128xf32>
    %c0_84 = arith.constant 0 : index
    %c0_85 = arith.constant 0 : index
    %190 = vector.load %arg19[%c0_84, %c0_85] : memref<2x128xf32, #tpu.memory_space<vmem>>, vector<2x128xf32>
    tpu.vector_store %arg19[%c0_84, %c0_85], %189 {strides = array<i32>} : memref<2x128xf32, #tpu.memory_space<vmem>>, vector<2x128xf32>,
    return
  }
}

</mosaic_0001>

<bundles_post_ra>
// kernel: video_classification_forward.1
= control target key start
LH: loop header
LB: loop body
LE: loop exit
PB: predicated region body
PF: predicated region fallthrough
CT: control target
= control target key end

     0   :  { %s3748_s0 = inlined_call_operand.vmem [shape: f32[16,192], index: 0, kind: input, shape index: {}]   ;;  %s3749_s1 = inlined_call_operand.vmem [shape: f32[16,128], index: 1, kind: input, shape index: {}]   ;;  %s3750_s2 = inlined_call_operand.vmem [shape: f32[16,16], index: 2, kind: input, shape index: {}]   ;;  %s3751_s3 = inlined_call_operand.vmem [shape: f32[192,128], index: 3, kind: input, shape index: {}]   ;;  %s3752_s4 = inlined_call_operand.vmem [shape: f32[1,128], index: 4, kind: input, shape index: {}]   ;;  %s3753_s5 = inlined_call_operand.vmem [shape: f32[128,384], index: 5, kind: input, shape index: {}]   ;;  %s3754_s6 = inlined_call_operand.vmem [shape: f32[1,384], index: 6, kind: input, shape index: {}]   ;;  %s3755_s7 = inlined_call_operand.vmem [shape: f32[128,128], index: 7, kind: input, shape index: {}]   ;;  %s3756_s8 = inlined_call_operand.vmem [shape: f32[1,128], index: 8, kind: input, shape index: {}]   ;;  %s3757_s9 = inlined_call_operand.vmem [shape: f32[1,128], index: 9, kind: input, shape index: {}]   ;;  %s3758_s10 = inlined_call_operand.vmem [shape: f32[1,128], index: 10, kind: input, shape index: {}]   ;;  %s3759_s11 = inlined_call_operand.vmem [shape: f32[1,128], index: 11, kind: input, shape index: {}]   ;;  %s3760_s12 = inlined_call_operand.vmem [shape: f32[1,128], index: 12, kind: input, shape index: {}]   ;;  %s3761_s13 = inlined_call_operand.vmem [shape: f32[128,512], index: 13, kind: input, shape index: {}]   ;;  %s3762_s14 = inlined_call_operand.vmem [shape: f32[1,512], index: 14, kind: input, shape index: {}]   ;;  %s3763_s15 = inlined_call_operand.vmem [shape: f32[512,128], index: 15, kind: input, shape index: {}]   ;;  %s3764_s16 = inlined_call_operand.vmem [shape: f32[1,128], index: 16, kind: input, shape index: {}]   ;;  %s3765_s17 = inlined_call_operand.hbm [shape: f32[128,128], index: 17, kind: input, shape index: {}]   ;;  %s3766_s18 = inlined_call_operand.vmem [shape: f32[1,128], index: 18, kind: input, shape index: {}]   ;;  %s3767_s19 = inlined_call_operand.hbm [shape: f32[2,128], index: 19, kind: output, shape index: {0}]   ;;  %s3768_s20 = inlined_call_operand.hbm [shape: f32[2,128], index: 20, kind: output, shape index: {1}]  }
   0x1   :  { %3773 = sst [smem:[#allocation11_spill]] %s3748_s0 }
   0x2   :  { %3774 = sst [smem:[#allocation12_spill]] %s3749_s1 }
   0x3   :  { %3775 = sst [smem:[#allocation13_spill]] %s3750_s2 }
   0x4   :  { %3776 = sst [smem:[#allocation14_spill]] %s3751_s3 }
   0x5   :  { %3777 = sst [smem:[#allocation15_spill]] %s3752_s4 }
   0x6   :  { %26 = vsyncpa [#allocation3], 0 }
   0x7   :  { %27 = vsyncpa [#allocation4], 0 }
   0x8   :  { %28 = vsyncpa [#allocation7], 0  ;;  %s2628_s1 = smov [#allocation2]  }
   0x9   :  { %s68_s22 = sshll.u32 %s2628_s1, 4  ;;  %s69_s22 = int_to_ptr.vmem [resolvable:$true] %s68_s22 }
   0xa   :  { %s2570_s23 = scalar_lea.vmem %s69_s22, 2048  ;;  %p2575_p1 = scmp.lt.s32.totalorder %s69_s22, %s69_s22 }
   0xb   :  { %p2571_p0 = scmp.ne.s32.totalorder %s69_s22, %s2570_s23  ;;  %p2576_p2 = scmp.lt.s32.totalorder %s2570_s23, %s2570_s23 }
   0xd   :  { %p2577_p3 = por %p2576_p2, %p2575_p1 }
   0xf   :  { %p2578_p4 = pnand %p2577_p3, %p2571_p0 }
  0x11   :  { %2581 = shalt.err (!%p2578_p4)
}
  0x12   :  { %s2629_s24 = smov 128   ;;  %s2630_s2 = smov 8  }
  0x13   :  { %74 = dma.hbm_to_vmem [thread:$0]  %s3765_s17, 2048, %s69_s22, [#allocation3], %s2629_s24, %s2629_s24, %s2630_s2  }
  0x14   :  { %2622 = dma.done.wait [#allocation3], 2048  }
  0x15   :  { %2623 = vsyncadd [#allocation3], 4294965248  ;;  %v2631_v0 = vmov 0.0   ;;  %s3778_s28 = sld [smem:[#allocation14_spill]]  ;;  %vm115_vm0 = vcmask 523264   ;;  %v288_v40 = vld [vmem:[%s3753_s5 + $0x170] sm:$0xff] }
  0x16   :  { %122 = vmatprep.subr.mxu0 %v2631_v0  ;;  %371 = vmatprep.mubr.f32.mxu1 %v2631_v0  ;;  %s3779_s3 = sld [smem:[#allocation11_spill]]  ;;  %v287_v41 = vld [vmem:[%s3753_s5 + $0x168] sm:$0xff]  ;;  %v285_v42 = vld [vmem:[%s3753_s5 + $0x158] sm:$0xff]  ;;  %v284_v43 = vld [vmem:[%s3753_s5 + $0x150] sm:$0xff]  ;;  %vm461_vm1 = vcmask 261120   ;;  %vm553_vm2 = vcmask 130048  }
  0x17   :  { %s3780_s27 = sld [smem:[#allocation15_spill]]  ;;  %307 = vmatprep.subr.mxu1 %v288_v40  ;;  %v282_v44 = vld [vmem:[%s3753_s5 + $0x140] sm:$0xff]  ;;  %v281_v45 = vld [vmem:[%s3753_s5 + $0x138] sm:$0xff]  ;;  %v279_v46 = vld [vmem:[%s3753_s5 + $0x128] sm:$0xff]  ;;  %s2632_s24 = smov 96   ;;  %vm1299_vm3 = vcmask 785408  }
  0x18   :  { %s3781_s30 = sld [smem:[#allocation12_spill]]  ;;  %308 = vmatpush1.msra.mxu1 %v287_v41  ;;  %v278_v47 = vld [vmem:[%s3753_s5 + $0x120] sm:$0xff]  ;;  %v276_v48 = vld [vmem:[%s3753_s5 + $0x110] sm:$0xff]  ;;  %v275_v57 = vld [vmem:[%s3753_s5 + $0x108] sm:$0xff]  ;;  %s2633_s2 = smov 64   ;;  %vm2635_vm4 = vmmov 0  }
  0x19   :  { %309 = vmatprep.subr.mxu1 %v285_v42  ;;  %v273_v58 = vld [vmem:[%s3753_s5 + $0xf8] sm:$0xff]  ;;  %v272_v59 = vld [vmem:[%s3753_s5 + $0xf0] sm:$0xff]  ;;  %v270_v60 = vld [vmem:[%s3753_s5 + $0xe0] sm:$0xff]  ;;  %s3782_s1 = sld [smem:[#allocation13_spill]]  ;;  %s2634_s25 = smov 32   ;;  %vm1998_vm5 = vcmask 1041409  }
  0x1a   :  { %310 = vmatpush1.msra.mxu1 %v284_v43  ;;  %v269_v61 = vld [vmem:[%s3753_s5 + $0xd8] sm:$0xff]  ;;  %v267_v62 = vld [vmem:[%s3753_s5 + $0xc8] sm:$0xff]  ;;  %v266_v63 = vld [vmem:[%s3753_s5 + $0xc0] sm:$0xff] }
  0x1b   :  { %v99_v1 = vld [vmem:[%s3778_s28 + $0x78] sm:$0xff]  ;;  %v98_v2 = vld [vmem:[%s3778_s28 + $0x70] sm:$0xff]  ;;  %v97_v3 = vld [vmem:[%s3778_s28 + $0x68] sm:$0xff]  ;;  %311 = vmatprep.subr.mxu1 %v282_v44 }
  0x1c   :  { %123 = vmatpush1.msra.mxu0 %v99_v1  ;;  %v96_v4 = vld [vmem:[%s3778_s28 + $0x60] sm:$0xff]  ;;  %v95_v5 = vld [vmem:[%s3778_s28 + $0x58] sm:$0xff]  ;;  %v94_v6 = vld [vmem:[%s3778_s28 + $0x50] sm:$0xff]  ;;  %312 = vmatpush1.msra.mxu1 %v281_v45 }
  0x1d   :  { %124 = vmatprep.subr.mxu0 %v2631_v0  ;;  %v81_v7 = vld [vmem:[%s3779_s3 + $0x8] sm:$0xff]  ;;  %v92_v9 = vld [vmem:[%s3778_s28 + $0x40] sm:$0xff]  ;;  %v91_v10 = vld [vmem:[%s3778_s28 + $0x38] sm:$0xff]  ;;  %313 = vmatprep.subr.mxu1 %v279_v46 }
  0x1e   :  { %125 = vmatpush1.msra.mxu0 %v98_v2  ;;  %2126 = vmatprep.mubr.msk.f32.mxu0 %vm115_vm0, %v81_v7  ;;  %v93_v8 = vld [vmem:[%s3778_s28 + $0x48] sm:$0xff]  ;;  %v90_v11 = vld [vmem:[%s3778_s28 + $0x30] sm:$0xff]  ;;  %v88_v13 = vld [vmem:[%s3778_s28 + $0x20] sm:$0xff] }
  0x1f   :  { %126 = vmatprep.subr.mxu0 %v2631_v0  ;;  %v89_v12 = vld [vmem:[%s3778_s28 + $0x28] sm:$0xff]  ;;  %v87_v14 = vld [vmem:[%s3778_s28 + $0x18] sm:$0xff]  ;;  %v86_v15 = vld [vmem:[%s3778_s28 + $0x10] sm:$0xff]  ;;  %314 = vmatpush1.msra.mxu1 %v278_v47 }
  0x20   :  { %127 = vmatpush1.msra.mxu0 %v97_v3  ;;  %v85_v16 = vld [vmem:[%s3778_s28 + $0x8] sm:$0xff]  ;;  %v84_v17 = vld [vmem:[%s3778_s28] sm:$0xff]  ;;  %v107_v18 = vld [vmem:[%s3778_s28 + $0xb8] sm:$0xff]  ;;  %315 = vmatprep.subr.mxu1 %v276_v48 }
  0x21   :  { %128 = vmatprep.subr.mxu0 %v2631_v0  ;;  %v106_v19 = vld [vmem:[%s3778_s28 + $0xb0] sm:$0xff]  ;;  %v105_v20 = vld [vmem:[%s3778_s28 + $0xa8] sm:$0xff]  ;;  %v104_v21 = vld [vmem:[%s3778_s28 + $0xa0] sm:$0xff]  ;;  %316 = vmatpush1.msra.mxu1 %v275_v57 }
  0x22   :  { %129 = vmatpush1.msra.mxu0 %v96_v4  ;;  %v103_v22 = vld [vmem:[%s3778_s28 + $0x98] sm:$0xff]  ;;  %v102_v23 = vld [vmem:[%s3778_s28 + $0x90] sm:$0xff]  ;;  %v101_v24 = vld [vmem:[%s3778_s28 + $0x88] sm:$0xff]  ;;  %317 = vmatprep.subr.mxu1 %v273_v58 }
  0x23   :  { %130 = vmatprep.subr.mxu0 %v2631_v0  ;;  %v100_v25 = vld [vmem:[%s3778_s28 + $0x80] sm:$0xff]  ;;  %v83_v27 = vld [vmem:[%s3779_s3 + $0x18] sm:$0xff]  ;;  %v82_v28 = vld [vmem:[%s3779_s3 + $0x10] sm:$0xff]  ;;  %318 = vmatpush1.msra.mxu1 %v272_v59 }
  0x24   :  { %131 = vmatpush1.msra.mxu0 %v95_v5  ;;  %v80_v26 = vld [vmem:[%s3779_s3] sm:$0xff]  ;;  %v198_v36 = vld [vmem:[%s3781_s30 + $0x8] sm:$0xff]  ;;  %319 = vmatprep.subr.mxu1 %v270_v60  ;;  %v264_v1 = vld [vmem:[%s3753_s5 + $0xb0] sm:$0xff] }
  0x25   :  { %132 = vmatprep.subr.mxu0 %v2631_v0  ;;  %v2125_v29 = vld [vmem:[%s3780_s27] ss:$0 sm:$0xff]  ;;  %320 = vmatpush1.msra.mxu1 %v269_v61  ;;  %v263_v2 = vld [vmem:[%s3753_s5 + $0xa8] sm:$0xff]  ;;  %v261_v3 = vld [vmem:[%s3753_s5 + $0x98] sm:$0xff] }
  0x26   :  { %133 = vmatpush1.msra.mxu0 %v94_v6  ;;  %v197_v31 = vld [vmem:[%s3781_s30] sm:$0xff]  ;;  %321 = vmatprep.subr.mxu1 %v267_v62  ;;  %v260_v4 = vld [vmem:[%s3753_s5 + $0x90] sm:$0xff]  ;;  %v257_v6 = vld [vmem:[%s3753_s5 + $0x78] sm:$0xff] }
  0x27   :  { %134 = vmatprep.subr.mxu0 %v2631_v0  ;;  %322 = vmatpush1.msra.mxu1 %v266_v63  ;;  %v258_v5 = vld [vmem:[%s3753_s5 + $0x80] sm:$0xff]  ;;  %v255_v7 = vld [vmem:[%s3753_s5 + $0x68] sm:$0xff]  ;;  %v268_v42 = vld [vmem:[%s3753_s5 + $0xd0] sm:$0xff] }
  0x28   :  { %135 = vmatpush1.msra.mxu0 %v93_v8  ;;  %323 = vmatprep.subr.mxu1 %v264_v1  ;;  %v254_v8 = vld [vmem:[%s3753_s5 + $0x60] sm:$0xff]  ;;  %v271_v41 = vld [vmem:[%s3753_s5 + $0xe8] sm:$0xff]  ;;  %v265_v43 = vld [vmem:[%s3753_s5 + $0xb8] sm:$0xff] }
  0x29   :  { %136 = vmatprep.subr.mxu0 %v2631_v0  ;;  %324 = vmatpush1.msra.mxu1 %v263_v2  ;;  %v274_v40 = vld [vmem:[%s3753_s5 + $0x100] sm:$0xff]  ;;  %v259_v45 = vld [vmem:[%s3753_s5 + $0x88] sm:$0xff]  ;;  %v256_v46 = vld [vmem:[%s3753_s5 + $0x70] sm:$0xff] }
  0x2a   :  { %137 = vmatpush1.msra.mxu0 %v92_v9  ;;  %325 = vmatprep.subr.mxu1 %v261_v3  ;;  %v252_v9 = vld [vmem:[%s3753_s5 + $0x50] sm:$0xff]  ;;  %v262_v44 = vld [vmem:[%s3753_s5 + $0xa0] sm:$0xff]  ;;  %v253_v47 = vld [vmem:[%s3753_s5 + $0x58] sm:$0xff] }
  0x2b   :  { %138 = vmatprep.subr.mxu0 %v2631_v0  ;;  %326 = vmatpush1.msra.mxu1 %v260_v4  ;;  %v250_v48 = vld [vmem:[%s3753_s5 + $0x40] sm:$0xff] }
  0x2c   :  { %139 = vmatpush1.msra.mxu0 %v91_v10  ;;  %327 = vmatprep.subr.mxu1 %v258_v5  ;;  %v251_v10 = vld [vmem:[%s3753_s5 + $0x48] sm:$0xff] }
  0x2d   :  { %140 = vmatprep.subr.mxu0 %v2631_v0  ;;  %328 = vmatpush1.msra.mxu1 %v257_v6 }
  0x2e   :  { %141 = vmatpush1.msra.mxu0 %v90_v11  ;;  %329 = vmatprep.subr.mxu1 %v255_v7  ;;  %v249_v11 = vld [vmem:[%s3753_s5 + $0x38] sm:$0xff] }
  0x2f   :  { %142 = vmatprep.subr.mxu0 %v2631_v0  ;;  %330 = vmatpush1.msra.mxu1 %v254_v8 }
  0x30   :  { %143 = vmatpush1.msra.mxu0 %v89_v12  ;;  %331 = vmatprep.subr.mxu1 %v252_v9  ;;  %v248_v12 = vld [vmem:[%s3753_s5 + $0x30] sm:$0xff] }
  0x31   :  { %144 = vmatprep.subr.mxu0 %v2631_v0  ;;  %332 = vmatpush1.msra.mxu1 %v251_v10  ;;  %v3080_v10 = vld [vmem:[%s3782_s1 + $0x8] sm:$0xff] }
  0x32   :  { %145 = vmatpush1.msra.mxu0 %v88_v13  ;;  %v246_v13 = vld [vmem:[%s3753_s5 + $0x20] sm:$0xff]  ;;  %333 = vmatprep.subr.mxu1 %v249_v11 }
  0x33   :  { %146 = vmatprep.subr.mxu0 %v2631_v0  ;;  %334 = vmatpush1.msra.mxu1 %v248_v12 }
  0x34   :  { %147 = vmatpush1.msra.mxu0 %v87_v14  ;;  %v245_v14 = vld [vmem:[%s3753_s5 + $0x18] sm:$0xff]  ;;  %335 = vmatprep.subr.mxu1 %v246_v13  ;;  %v3085_v13 = vld [vmem:[%s3782_s1] sm:$0xff] }
  0x35   :  { %148 = vmatprep.subr.mxu0 %v2631_v0  ;;  %336 = vmatpush1.msra.mxu1 %v245_v14 }
  0x36   :  { %149 = vmatpush1.msra.mxu0 %v86_v15  ;;  %v243_v15 = vld [vmem:[%s3753_s5 + $0x8] sm:$0xff] }
  0x37   :  { %150 = vmatprep.subr.mxu0 %v2631_v0  ;;  %337 = vmatprep.subr.mxu1 %v243_v15 }
  0x38   :  { %151 = vmatpush1.msra.mxu0 %v85_v16  ;;  %v242_v16 = vld [vmem:[%s3753_s5] sm:$0xff] }
  0x39   :  { %152 = vmatprep.subr.mxu0 %v2631_v0  ;;  %338 = vmatpush1.msra.mxu1 %v242_v16 }
  0x3a   :  { %153 = vmatpush1.msra.mxu0 %v84_v17  ;;  %v289_v17 = vld [vmem:[%s3753_s5 + $0x178] sm:$0xff] }
  0x3b   :  { %170 = vmatprep.subr.mxu0 %v2631_v0  ;;  %2320 = vmatprep.subr.mxu1 %v289_v17 }
  0x3c   :  { %171 = vmatpush2.msra.mxu0 %v107_v18 }
  0x3d   :  { %172 = vmatprep.subr.mxu0 %v2631_v0 }
  0x3e   :  { %173 = vmatpush2.msra.mxu0 %v106_v19 }
  0x3f   :  { %174 = vmatprep.subr.mxu0 %v2631_v0 }
  0x40   :  { %175 = vmatpush2.msra.mxu0 %v105_v20 }
  0x41   :  { %176 = vmatprep.subr.mxu0 %v2631_v0 }
  0x42   :  { %177 = vmatpush2.msra.mxu0 %v104_v21 }
  0x43   :  { %178 = vmatprep.subr.mxu0 %v2631_v0 }
  0x44   :  { %179 = vmatpush2.msra.mxu0 %v103_v22 }
  0x45   :  { %180 = vmatprep.subr.mxu0 %v2631_v0 }
  0x46   :  { %181 = vmatpush2.msra.mxu0 %v102_v23 }
  0x47   :  { %182 = vmatprep.subr.mxu0 %v2631_v0 }
  0x48   :  { %183 = vmatpush2.msra.mxu0 %v101_v24 }
  0x49   :  { %184 = vmatprep.subr.mxu0 %v2631_v0 }
  0x4a   :  { %185 = vmatpush2.msra.mxu0 %v100_v25  ;;  %v2128_v25 = vld [vmem:[%s3757_s9] ss:$0 sm:$0xff] }
  0x4b   :  { %187 = vmatmul.mubr.f32.vlgmr.msra.gmra.mxu0 %v80_v26 }
  0x4c   :  { %2127 = vmatprep.mubr.msk.f32.mxu0 %vm115_vm0, %v83_v27  ;;  %v2129_v27 = vld [vmem:[%s3758_s10] ss:$0 sm:$0xff] }
  0x4f   :  { %192 = vmatmul.mubr.f32.gmra.mxu0 %v82_v28 }
 0x10b   :  { %v188_v30 = vpop.f32.mrf.mxu0 }
 0x10c   :  { %v189_v32 = vadd.f32 %v2125_v29, %v188_v30 }
 0x10d   :  { %v190_v33 = vpop.f32.mrf.mxu0 }
 0x10e   :  { %v2863_v34 = vadd.f32 %v197_v31, %v189_v32  ;;  %v286_v32 = vld [vmem:[%s3753_s5 + $0x160] sm:$0xff] }
 0x10f   :  { %v193_v35 = vpop.f32.mrf.mxu0 }
 0x110   :  { %v194_v37 = vadd.f32 %v2125_v29, %v193_v35  ;;  %203 = vadd.xlane.f32.xlu0 %v2863_v34  ;;  %v283_v35 = vld [vmem:[%s3753_s5 + $0x148] sm:$0xff] }
 0x111   :  { %v195_v38 = vpop.f32.mrf.mxu0 }
 0x112   :  { %v2869_v39 = vadd.f32 %v198_v36, %v194_v37  ;;  %v280_v37 = vld [vmem:[%s3753_s5 + $0x130] sm:$0xff]  ;;  %v277_v38 = vld [vmem:[%s3753_s5 + $0x118] sm:$0xff] }
 0x114   :  { %205 = vadd.xlane.f32.xlu0 %v2869_v39 }
 0x199   :  { %v204_v49 = vpop.xlane.xlu0 %203 }
 0x19a   :  { %v208_v50 = vmul.f32 0.0078125, %v204_v49  ;;  %v247_v49 = vld [vmem:[%s3753_s5 + $0x28] sm:$0xff] }
 0x19c   :  { %v2900_v51 = vsub.f32 %v2863_v34, %v208_v50  ;;  %v244_v50 = vld [vmem:[%s3753_s5 + $0x10] sm:$0xff] }
 0x19d   :  { %v206_v52 = vpop.xlane.xlu0 %205 }
 0x19e   :  { %v209_v53 = vmul.f32 0.0078125, %v206_v52  ;;  %v212_v54 = vmul.f32 %v2900_v51, %v2900_v51 }
 0x1a0   :  { %v2905_v55 = vsub.f32 %v2869_v39, %v209_v53  ;;  %214 = vadd.xlane.f32.xlu1 %v212_v54  ;;  %v290_v54 = vld [vmem:[%s3754_s6] sm:$0x7] }
 0x1a2   :  { %v213_v56 = vmul.f32 %v2905_v55, %v2905_v55 }
 0x1a4   :  { %216 = vadd.xlane.f32.xlu1 %v213_v56 }
 0x229   :  { %v215_v18 = vpop.xlane.xlu1 %214 }
 0x22a   :  { %v218_v19 = vmul.f32 0.0078125, %v215_v18 }
 0x22c   :  { %v220_v20 = vadd.f32 1e-05, %v218_v19 }
 0x22d   :  { %v217_v21 = vpop.xlane.xlu1 %216 }
 0x22e   :  { %2506 = vrsqrt.f32 %v220_v20  ;;  %v219_v22 = vmul.f32 0.0078125, %v217_v21 }
 0x230   :  { %v221_v23 = vadd.f32 1e-05, %v219_v22 }
 0x232   :  { %2508 = vrsqrt.f32 %v221_v23 }
 0x23b   :  { %v2507_v24 = vpop.eup %2506 }
 0x23c   :  { %v224_v26 = vmul.f32 %v2507_v24, %v2900_v51  ;;  %v292_v51 = vlaneseq }
 0x23e   :  { %v232_v28 = vmul.f32 %v2128_v25, %v224_v26  ;;  %v3035_v52 = vshrl.u32 %v292_v51, 7 }
 0x23f   :  { %v2509_v29 = vpop.eup %2508 }
 0x240   :  { %v240_v30 = vadd.f32 %v2129_v27, %v232_v28  ;;  %v225_v31 = vmul.f32 %v2509_v29, %v2905_v55  ;;  %v294_v53 = vsub.s32 0, %v3035_v52  ;;  %v298_v58 = vsub.s32 1, %v3035_v52 }
 0x241   :  { %v302_v3 = vsub.s32 2, %v3035_v52 }
 0x242   :  { %372 = vmatmul.mubr.f32.vlgmr.msra.gmra.mxu1 %v240_v30  ;;  %v233_v33 = vmul.f32 %v2128_v25, %v225_v31  ;;  %v295_v55 = vrot.slane %v290_v54, %v294_v53  ;;  %v299_v61 = vrot.slane %v290_v54, %v298_v58 }
 0x243   :  { %2321 = vmatpush3.msra.mxu1 %v289_v17  ;;  %377 = vmatprep.mubr.f32.mxu1 %v2631_v0  ;;  %v303_v4 = vrot.slane %v290_v54, %v302_v3 }
 0x244   :  { %2322 = vmatprep.subr.mxu1 %v286_v32  ;;  %v241_v36 = vadd.f32 %v2129_v27, %v233_v33 }
 0x245   :  { %2323 = vmatpush3.msra.mxu1 %v286_v32 }
 0x246   :  { %2324 = vmatprep.subr.mxu1 %v283_v35  ;;  %378 = vmatmul.mubr.f32.gmra.mxu1 %v241_v36 }
 0x247   :  { %2325 = vmatpush3.msra.mxu1 %v283_v35  ;;  %2352 = vmatprep.mubr.f32.mxu1 %v240_v30 }
 0x248   :  { %2326 = vmatprep.subr.mxu1 %v280_v37 }
 0x249   :  { %2327 = vmatpush3.msra.mxu1 %v280_v37 }
 0x24a   :  { %2328 = vmatprep.subr.mxu1 %v277_v38 }
 0x24b   :  { %2329 = vmatpush3.msra.mxu1 %v277_v38 }
 0x24c   :  { %2330 = vmatprep.subr.mxu1 %v274_v40 }
 0x24d   :  { %2331 = vmatpush3.msra.mxu1 %v274_v40 }
 0x24e   :  { %2332 = vmatprep.subr.mxu1 %v271_v41 }
 0x24f   :  { %2333 = vmatpush3.msra.mxu1 %v271_v41 }
 0x250   :  { %2334 = vmatprep.subr.mxu1 %v268_v42 }
 0x251   :  { %2335 = vmatpush3.msra.mxu1 %v268_v42 }
 0x252   :  { %2336 = vmatprep.subr.mxu1 %v265_v43 }
 0x253   :  { %2337 = vmatpush3.msra.mxu1 %v265_v43 }
 0x254   :  { %2338 = vmatprep.subr.mxu1 %v262_v44 }
 0x255   :  { %2339 = vmatpush3.msra.mxu1 %v262_v44 }
 0x256   :  { %2340 = vmatprep.subr.mxu1 %v259_v45 }
 0x257   :  { %2341 = vmatpush3.msra.mxu1 %v259_v45 }
 0x258   :  { %2342 = vmatprep.subr.mxu1 %v256_v46 }
 0x259   :  { %2343 = vmatpush3.msra.mxu1 %v256_v46 }
 0x25a   :  { %2344 = vmatprep.subr.mxu1 %v253_v47 }
 0x25b   :  { %2345 = vmatpush3.msra.mxu1 %v253_v47 }
 0x25c   :  { %2346 = vmatprep.subr.mxu1 %v250_v48 }
 0x25d   :  { %2347 = vmatpush3.msra.mxu1 %v250_v48 }
 0x25e   :  { %2348 = vmatprep.subr.mxu1 %v247_v49 }
 0x25f   :  { %2349 = vmatpush3.msra.mxu1 %v247_v49 }
 0x260   :  { %2350 = vmatprep.subr.mxu1 %v244_v50 }
 0x261   :  { %2351 = vmatpush3.msra.mxu1 %v244_v50 }
 0x262   :  { %2353 = vmatmul.mubr.f32.vlgmr.msra.gmra.mxu1 %v241_v36 }
 0x302   :  { %v373_v56 = vpop.f32.mrf.mxu1 }
 0x303   :  { %v3043_v57 = vadd.f32 %v373_v56, %v295_v55 }
 0x304   :  { %v375_v59 = vpop.f32.mrf.mxu1 }
 0x305   :  { %2359 = vmatprep.mubr.msk.f32.mxu0 %vm461_vm1, %v3043_v57  ;;  %v3052_v1 = vadd.f32 %v375_v59, %v299_v61 }
 0x306   :  { %v379_v60 = vpop.f32.mrf.mxu1 }
 0x307   :  { %v3062_v2 = vadd.f32 %v379_v60, %v295_v55 }
 0x308   :  { %v381_v62 = vpop.f32.mrf.mxu1 }
 0x309   :  { %v3050_v63 = vadd.f32 %v381_v62, %v299_v61 }
 0x30b   :  { %2355 = vmatprep.subr.msk.mxu0 %vm461_vm1, %v3050_v63 }
 0x30c   :  { %2356 = vmatpush3.xpose.msk.msra.mxu0 %vm461_vm1, %v3050_v63 }
 0x30d   :  { %2357 = vmatprep.subr.msk.mxu0 %vm461_vm1, %v3052_v1 }
 0x310   :  { %2358 = vmatpush3.xpose.msk.msra.mxu0 %vm461_vm1, %v3052_v1 }
 0x313   :  { %2360 = vmatmul.mubr.msk.f32.vlgmr.msra.gmra.mxu0 %vm461_vm1, %v3062_v2 }
 0x322   :  { %v2354_v5 = vpop.f32.mrf.mxu1 }
 0x323   :  { %v3069_v6 = vadd.f32 %v2354_v5, %v303_v4 }
 0x324   :  { %v450_v7 = vpop.f32.mrf.mxu1 }
 0x325   :  { %v3071_v8 = vadd.f32 %v450_v7, %v303_v4  ;;  %2362 = vmatprep.subr.mxu0 %v3069_v6 }
 0x326   :  { %2363 = vmatpush3.msra.mxu0 %v3069_v6 }
 0x327   :  { %2364 = vmatprep.subr.mxu0 %v3071_v8 }
 0x328   :  { %2365 = vmatpush3.msra.mxu0 %v3071_v8 }
 0x3d3   :  { %v2361_v9 = vpop.f32.mrf.mxu0 }
 0x3d4   :  { %v550_v11 = vmul.f32 0.17677669, %v2361_v9 }
 0x3d5   :  { %v540_v12 = vpop.f32.mrf.mxu0 }
 0x3d6   :  { %v549_v14 = vmul.f32 0.17677669, %v540_v12  ;;  %v552_v15 = vadd.f32 %v550_v11, %v3080_v10 }
 0x3d8   :  { %v557_v16 = vsel %vm553_vm2, %v552_v15, -inf  ;;  %v551_v17 = vadd.f32 %v549_v14, %v3085_v13 }
 0x3d9   :  { %558 = vmax.xlane.f32.xlu1 %v557_v16 }
 0x3da   :  { %v554_v18 = vsel %vm553_vm2, %v551_v17, -inf }
 0x3db   :  { %555 = vmax.xlane.f32.xlu0 %v554_v18 }
 0x462   :  { %v559_v19 = vpop.xlane.xlu1 %558 }
 0x463   :  { %v561_v20 = vsub.f32 %v552_v15, %v559_v19 }
 0x464   :  { %v556_v21 = vpop.xlane.xlu0 %555 }
 0x465   :  { %v564_v22 = vmul.f32 1.442695, %v561_v20  ;;  %v560_v23 = vsub.f32 %v551_v17, %v556_v21 }
 0x467   :  { %2510 = vpow2.f32 %v564_v22  ;;  %v562_v24 = vmul.f32 1.442695, %v560_v23 }
 0x469   :  { %2512 = vpow2.f32 %v562_v24 }
 0x474   :  { %v2511_v25 = vpop.eup %2510 }
 0x475   :  { %v569_v26 = vsel %vm553_vm2, %v2511_v25, 0.0 }
 0x476   :  { %v2513_v27 = vpop.eup %2512  ;;  %570 = vadd.xlane.f32.xlu1 %v569_v26 }
 0x477   :  { %v566_v28 = vsel %vm553_vm2, %v2513_v27, 0.0 }
 0x478   :  { %567 = vadd.xlane.f32.xlu0 %v566_v28 }
 0x487   :  { %661 = vrot.lane.b32.xlu1 %v3052_v1, %s2632_s24 }
 0x48b   :  { %657 = vrot.lane.b32.xlu1 %v3043_v57, %s2632_s24 }
 0x48e   :  { %663 = vrot.lane.b32.xlu0 %v3050_v63, %s2632_s24 }
 0x48f   :  { %869 = vrot.lane.b32.xlu1 %v3050_v63, %s2633_s2 }
 0x492   :  { %659 = vrot.lane.b32.xlu0 %v3062_v2, %s2632_s24 }
 0x493   :  { %867 = vrot.lane.b32.xlu1 %v3052_v1, %s2633_s2 }
 0x496   :  { %863 = vrot.lane.b32.xlu0 %v3043_v57, %s2633_s2 }
 0x497   :  { %865 = vrot.lane.b32.xlu1 %v3062_v2, %s2633_s2 }
 0x4ff   :  { %v571_v29 = vpop.xlane.xlu1 %570 }
 0x500   :  { %2514 = vrcp.f32 %v571_v29 }
 0x501   :  { %v568_v30 = vpop.xlane.xlu0 %567 }
 0x502   :  { %2516 = vrcp.f32 %v568_v30 }
 0x503   :  { %v662_v32 = vpop.permute.xlu1 %661 }
 0x505   :  { %v664_v31 = vpop.permute.xlu0 %663 }
 0x506   :  { %2369 = vmatprep.subr.msk.mxu0 %vm461_vm1, %v664_v31 }
 0x507   :  { %v658_v36 = vpop.permute.xlu1 %657 }
 0x509   :  { %v660_v40 = vpop.permute.xlu0 %659 }
 0x50b   :  { %v870_v41 = vpop.permute.xlu1 %869 }
 0x50d   :  { %v2515_v33 = vpop.eup %2514  ;;  %v864_v42 = vpop.permute.xlu0 %863 }
 0x50e   :  { %v575_v38 = vmul.f32 %v2515_v33, %v2511_v25 }
 0x50f   :  { %v2517_v35 = vpop.eup %2516  ;;  %v868_v43 = vpop.permute.xlu1 %867 }
 0x510   :  { %v573_v37 = vmul.f32 %v2517_v35, %v2513_v27 }
 0x512   :  { %2366 = vmatprep.mubr.msk.f32.mxu0 %vm553_vm2, %v573_v37 }
 0x513   :  { %2367 = vmatmul.mubr.msk.f32.vlgmr.msra.gmra.mxu0 %vm553_vm2, %v575_v38  ;;  %v866_v44 = vpop.permute.xlu1 %865 }
 0x514   :  { %2370 = vmatpush3.xpose.msk.msra.mxu0 %vm461_vm1, %v664_v31  ;;  %2373 = vmatprep.mubr.msk.f32.mxu0 %vm461_vm1, %v658_v36 }
 0x515   :  { %2371 = vmatprep.subr.msk.mxu0 %vm461_vm1, %v662_v32 }
 0x518   :  { %2372 = vmatpush3.xpose.msk.msra.mxu0 %vm461_vm1, %v662_v32 }
 0x519   :  { %2383 = vmatprep.subr.msk.mxu0 %vm461_vm1, %v870_v41 }
 0x51b   :  { %2374 = vmatmul.mubr.msk.f32.vlgmr.msra.gmra.mxu0 %vm461_vm1, %v660_v40 }
 0x51c   :  { %2384 = vmatpush3.xpose.msk.msra.mxu0 %vm461_vm1, %v870_v41  ;;  %2387 = vmatprep.mubr.msk.f32.mxu0 %vm461_vm1, %v864_v42 }
 0x51d   :  { %2385 = vmatprep.subr.msk.mxu0 %vm461_vm1, %v868_v43 }
 0x520   :  { %2386 = vmatpush3.xpose.msk.msra.mxu0 %vm461_vm1, %v868_v43 }
 0x523   :  { %2388 = vmatmul.mubr.msk.f32.vlgmr.msra.gmra.mxu0 %vm461_vm1, %v866_v44 }
 0x5d3   :  { %v3123_v45 = vpop.f32.mrf.mxu0 }
 0x5d5   :  { %v3125_v46 = vpop.f32.mrf.mxu0 }
 0x5db   :  { %v2375_v47 = vpop.f32.mrf.mxu0 }
 0x5dc   :  { %v749_v48 = vmul.f32 0.17677669, %v2375_v47 }
 0x5dd   :  { %v739_v49 = vpop.f32.mrf.mxu0 }
 0x5de   :  { %v748_v50 = vmul.f32 0.17677669, %v739_v49  ;;  %v751_v51 = vadd.f32 %v749_v48, %v3080_v10 }
 0x5e0   :  { %v755_v54 = vsel %vm553_vm2, %v751_v51, -inf  ;;  %v750_v55 = vadd.f32 %v748_v50, %v3085_v13 }
 0x5e1   :  { %756 = vmax.xlane.f32.xlu1 %v755_v54 }
 0x5e2   :  { %v752_v56 = vsel %vm553_vm2, %v750_v55, -inf }
 0x5e3   :  { %753 = vmax.xlane.f32.xlu0 %v752_v56  ;;  %v2389_v59 = vpop.f32.mrf.mxu0 }
 0x5e4   :  { %v955_v61 = vmul.f32 0.17677669, %v2389_v59 }
 0x5e5   :  { %v945_v60 = vpop.f32.mrf.mxu0 }
 0x5e6   :  { %v954_v62 = vmul.f32 0.17677669, %v945_v60  ;;  %v957_v7 = vadd.f32 %v955_v61, %v3080_v10 }
 0x5e8   :  { %v956_v4 = vadd.f32 %v954_v62, %v3085_v13  ;;  %v961_v9 = vsel %vm553_vm2, %v957_v7, -inf }
 0x5ea   :  { %v958_v5 = vsel %vm553_vm2, %v956_v4, -inf }
 0x5eb   :  { %959 = vmax.xlane.f32.xlu0 %v958_v5 }
 0x5ef   :  { %962 = vmax.xlane.f32.xlu0 %v961_v9 }
 0x5f2   :  { %776 = vrot.lane.b32.xlu1 %v3071_v8, %s2632_s24 }
 0x5f6   :  { %982 = vrot.lane.b32.xlu1 %v3069_v6, %s2633_s2 }
 0x5fa   :  { %980 = vrot.lane.b32.xlu1 %v3071_v8, %s2633_s2 }
 0x605   :  { %778 = vrot.lane.b32.xlu0 %v3069_v6, %s2632_s24 }
 0x66a   :  { %v757_v11 = vpop.xlane.xlu1 %756 }
 0x66b   :  { %v759_v12 = vsub.f32 %v751_v51, %v757_v11 }
 0x66c   :  { %v754_v14 = vpop.xlane.xlu0 %753 }
 0x66d   :  { %v762_v15 = vmul.f32 1.442695, %v759_v12  ;;  %v758_v16 = vsub.f32 %v750_v55, %v754_v14 }
 0x66e   :  { %v777_v23 = vpop.permute.xlu1 %776 }
 0x66f   :  { %2518 = vpow2.f32 %v762_v15  ;;  %v760_v17 = vmul.f32 1.442695, %v758_v16 }
 0x671   :  { %2520 = vpow2.f32 %v760_v17 }
 0x672   :  { %v983_v30 = vpop.permute.xlu1 %982 }
 0x674   :  { %v960_v18 = vpop.xlane.xlu0 %959 }
 0x675   :  { %v964_v19 = vsub.f32 %v956_v4, %v960_v18 }
 0x676   :  { %v981_v36 = vpop.permute.xlu1 %980 }
 0x677   :  { %v966_v20 = vmul.f32 1.442695, %v964_v19 }
 0x678   :  { %v963_v21 = vpop.xlane.xlu0 %962 }
 0x679   :  { %2522 = vpow2.f32 %v966_v20  ;;  %v965_v22 = vsub.f32 %v957_v7, %v963_v21 }
 0x67b   :  { %v968_v24 = vmul.f32 1.442695, %v965_v22 }
 0x67c   :  { %v2519_v25 = vpop.eup %2518  ;;  %v779_v26 = vpop.permute.xlu0 %778 }
 0x67d   :  { %2524 = vpow2.f32 %v968_v24  ;;  %2376 = vmatprep.subr.mxu1 %v779_v26  ;;  %v767_v27 = vsel %vm553_vm2, %v2519_v25, 0.0 }
 0x67e   :  { %v2521_v28 = vpop.eup %2520  ;;  %768 = vadd.xlane.f32.xlu1 %v767_v27  ;;  %2377 = vmatpush3.msra.mxu1 %v779_v26 }
 0x67f   :  { %2378 = vmatprep.subr.mxu1 %v777_v23  ;;  %v764_v29 = vsel %vm553_vm2, %v2521_v28, 0.0 }
 0x680   :  { %765 = vadd.xlane.f32.xlu0 %v764_v29  ;;  %2379 = vmatpush3.msra.mxu1 %v777_v23 }
 0x681   :  { %2390 = vmatprep.subr.mxu1 %v983_v30 }
 0x686   :  { %v2523_v31 = vpop.eup %2522 }
 0x687   :  { %v970_v32 = vsel %vm553_vm2, %v2523_v31, 0.0 }
 0x688   :  { %971 = vadd.xlane.f32.xlu0 %v970_v32  ;;  %v1314_v32 = vld [vmem:[%s3755_s7 + $0x60] sm:$0xff] }
 0x68a   :  { %v2525_v33 = vpop.eup %2524 }
 0x68b   :  { %v973_v35 = vsel %vm553_vm2, %v2525_v33, 0.0 }
 0x68c   :  { %974 = vadd.xlane.f32.xlu1 %v973_v35  ;;  %v1312_v35 = vld [vmem:[%s3755_s7 + $0x50] sm:$0xff] }
 0x69d   :  { %1071 = vrot.lane.b32.xlu1 %v3052_v1, %s2634_s25 }
 0x69e   :  { %1073 = vrot.lane.b32.xlu0 %v3050_v63, %s2634_s25 }
 0x6a1   :  { %1069 = vrot.lane.b32.xlu1 %v3062_v2, %s2634_s25 }
 0x6a2   :  { %1067 = vrot.lane.b32.xlu0 %v3043_v57, %s2634_s25 }
 0x707   :  { %v769_v37 = vpop.xlane.xlu1 %768 }
 0x708   :  { %2526 = vrcp.f32 %v769_v37  ;;  %v1310_v37 = vld [vmem:[%s3755_s7 + $0x40] sm:$0xff] }
 0x709   :  { %v766_v38 = vpop.xlane.xlu0 %765 }
 0x70a   :  { %2528 = vrcp.f32 %v766_v38  ;;  %v1309_v38 = vld [vmem:[%s3755_s7 + $0x38] sm:$0xff] }
 0x711   :  { %v972_v40 = vpop.xlane.xlu0 %971 }
 0x712   :  { %2530 = vrcp.f32 %v972_v40  ;;  %v1308_v40 = vld [vmem:[%s3755_s7 + $0x30] sm:$0xff] }
 0x715   :  { %v975_v41 = vpop.xlane.xlu1 %974  ;;  %v2527_v42 = vpop.eup %2526 }
 0x716   :  { %2532 = vrcp.f32 %v975_v41  ;;  %v773_v44 = vmul.f32 %v2527_v42, %v2519_v25  ;;  %v1074_v57 = vpop.permute.xlu0 %1073  ;;  %v1307_v41 = vld [vmem:[%s3755_s7 + $0x28] sm:$0xff]  ;;  %v1306_v42 = vld [vmem:[%s3755_s7 + $0x20] sm:$0xff] }
 0x717   :  { %v2529_v1 = vpop.eup %2528 }
 0x718   :  { %v771_v43 = vmul.f32 %v2529_v1, %v2521_v28  ;;  %v1305_v1 = vld [vmem:[%s3755_s7 + $0x18] sm:$0xff] }
 0x719   :  { %v1072_v50 = vpop.permute.xlu1 %1071 }
 0x71a   :  { %2380 = vmatprep.mubr.msk.f32.mxu1 %vm553_vm2, %v771_v43  ;;  %v1068_v49 = vpop.permute.xlu0 %1067  ;;  %v1304_v43 = vld [vmem:[%s3755_s7 + $0x10] sm:$0xff] }
 0x71b   :  { %2381 = vmatmul.mubr.msk.f32.vlgmr.msra.gmra.mxu1 %vm553_vm2, %v773_v44  ;;  %v1303_v44 = vld [vmem:[%s3755_s7 + $0x8] sm:$0xff] }
 0x71c   :  { %2391 = vmatpush3.msra.mxu1 %v983_v30  ;;  %v1316_v30 = vld [vmem:[%s3755_s7 + $0x70] sm:$0xff] }
 0x71d   :  { %2392 = vmatprep.subr.mxu1 %v981_v36  ;;  %v1070_v51 = vpop.permute.xlu1 %1069 }
 0x71e   :  { %2393 = vmatpush3.msra.mxu1 %v981_v36  ;;  %v1311_v36 = vld [vmem:[%s3755_s7 + $0x48] sm:$0xff] }
 0x71f   :  { %v2531_v63 = vpop.eup %2530  ;;  %2397 = vmatprep.subr.msk.mxu1 %vm461_vm1, %v1074_v57 }
 0x720   :  { %v977_v2 = vmul.f32 %v2531_v63, %v2523_v31  ;;  %v1315_v31 = vld [vmem:[%s3755_s7 + $0x68] sm:$0xff] }
 0x722   :  { %2394 = vmatprep.mubr.msk.f32.mxu1 %vm553_vm2, %v977_v2 }
 0x723   :  { %v2533_v47 = vpop.eup %2532 }
 0x724   :  { %v979_v48 = vmul.f32 %v2533_v47, %v2525_v33  ;;  %v1313_v33 = vld [vmem:[%s3755_s7 + $0x58] sm:$0xff] }
 0x726   :  { %2395 = vmatmul.mubr.msk.f32.vlgmr.msra.gmra.mxu1 %vm553_vm2, %v979_v48 }
 0x727   :  { %2398 = vmatpush3.xpose.msk.msra.mxu1 %vm461_vm1, %v1074_v57  ;;  %2401 = vmatprep.mubr.msk.f32.mxu1 %vm461_vm1, %v1068_v49  ;;  %v1302_v57 = vld [vmem:[%s3755_s7] sm:$0xff] }
 0x728   :  { %2399 = vmatprep.subr.msk.mxu1 %vm461_vm1, %v1072_v50 }
 0x72b   :  { %2400 = vmatpush3.xpose.msk.msra.mxu1 %vm461_vm1, %v1072_v50 }
 0x72e   :  { %2402 = vmatmul.mubr.msk.f32.vlgmr.msra.gmra.mxu1 %vm461_vm1, %v1070_v51 }
 0x72f   :  { %1594 = vmatprep.mubr.f32.mxu1 %v2631_v0 }
 0x7db   :  { %v2382_v54 = vpop.f32.mrf.mxu1 }
 0x7dd   :  { %v854_v55 = vpop.f32.mrf.mxu1 }
 0x7de   :  { %v2491_v12 = vpack.i.bf16 %v2382_v54, %v854_v55 }
 0x7e6   :  { %v2396_v56 = vpop.f32.mrf.mxu1 }
 0x7e8   :  { %v1058_v59 = vpop.f32.mrf.mxu1 }
 0x7e9   :  { %v2496_v14 = vpack.i.bf16 %v2396_v56, %v1058_v59 }
 0x7ee   :  { %v2403_v60 = vpop.f32.mrf.mxu1 }
 0x7ef   :  { %v1159_v61 = vmul.f32 0.17677669, %v2403_v60 }
 0x7f0   :  { %v1149_v62 = vpop.f32.mrf.mxu1 }
 0x7f1   :  { %v1158_v4 = vmul.f32 0.17677669, %v1149_v62  ;;  %v1161_v5 = vadd.f32 %v1159_v61, %v3080_v10 }
 0x7f3   :  { %v1165_v7 = vsel %vm553_vm2, %v1161_v5, -inf  ;;  %v1160_v9 = vadd.f32 %v1158_v4, %v3085_v13 }
 0x7f4   :  { %1166 = vmax.xlane.f32.xlu1 %v1165_v7 }
 0x7f5   :  { %v1162_v11 = vsel %vm553_vm2, %v1160_v9, -inf }
 0x7f6   :  { %1163 = vmax.xlane.f32.xlu0 %v1162_v11 }
 0x805   :  { %1184 = vrot.lane.b32.xlu1 %v3071_v8, %s2634_s25 }
 0x809   :  { %2492 = vrot.lane.b32.xlu1 %v2491_v12, %s2634_s25 }
 0x80d   :  { %2497 = vrot.lane.b32.xlu1 %v2496_v14, %s2633_s2 }
 0x87d   :  { %v1167_v15 = vpop.xlane.xlu1 %1166 }
 0x87e   :  { %v1169_v16 = vsub.f32 %v1161_v5, %v1167_v15 }
 0x87f   :  { %v1164_v10 = vpop.xlane.xlu0 %1163 }
 0x880   :  { %v1172_v17 = vmul.f32 1.442695, %v1169_v16  ;;  %v1168_v18 = vsub.f32 %v1160_v9, %v1164_v10  ;;  %v1505_v10 = vld [vmem:[%s3761_s13 + $0x1e8] sm:$0xff] }
 0x881   :  { %v1185_v25 = vpop.permute.xlu1 %1184  ;;  %1530 = vmatprep.subr.mxu1 %v1505_v10  ;;  %v1459_v10 = vld [vmem:[%s3761_s13 + $0x78] sm:$0xff] }
 0x882   :  { %2534 = vpow2.f32 %v1172_v17  ;;  %v1170_v13 = vmul.f32 1.442695, %v1168_v18  ;;  %v1507_v17 = vld [vmem:[%s3761_s13 + $0x1f8] sm:$0xff]  ;;  %v1501_v18 = vld [vmem:[%s3761_s13 + $0x1c8] sm:$0xff] }
 0x884   :  { %2536 = vpow2.f32 %v1170_v13  ;;  %v1503_v13 = vld [vmem:[%s3761_s13 + $0x1d8] sm:$0xff] }
 0x885   :  { %v2493_v48 = vpop.permute.xlu1 %2492 }
 0x886   :  { %v2495_v50 = vunpack.i.h.bf16 %v2493_v48  ;;  %v2494_v51 = vunpack.i.l.bf16 %v2493_v48  ;;  %v1479_v48 = vld [vmem:[%s3761_s13 + $0x118] sm:$0xff] }
 0x888   :  { %v1296_v59 = vsel %vm461_vm1, %v3123_v45, %v2495_v50  ;;  %v1295_v62 = vsel %vm461_vm1, %v3125_v46, %v2494_v51  ;;  %v2154_v45 = vld [vmem:[%s3756_s8] ss:$0 sm:$0xff]  ;;  %v1478_v50 = vld [vmem:[%s3761_s13 + $0x110] sm:$0xff]  ;;  %v1473_v51 = vld [vmem:[%s3761_s13 + $0xe8] sm:$0xff] }
 0x889   :  { %v2498_v49 = vpop.permute.xlu1 %2497 }
 0x88a   :  { %v2500_v54 = vunpack.i.h.bf16 %v2498_v49  ;;  %v2499_v55 = vunpack.i.l.bf16 %v2498_v49  ;;  %v1476_v49 = vld [vmem:[%s3761_s13 + $0x100] sm:$0xff] }
 0x88c   :  { %v1297_v4 = vsel %vm115_vm0, %v1295_v62, %v2499_v55  ;;  %v1298_v5 = vsel %vm115_vm0, %v1296_v59, %v2500_v54  ;;  %v1475_v54 = vld [vmem:[%s3761_s13 + $0xf8] sm:$0xff]  ;;  %v1472_v55 = vld [vmem:[%s3761_s13 + $0xe0] sm:$0xff]  ;;  %v1469_v59 = vld [vmem:[%s3761_s13 + $0xc8] sm:$0xff] }
 0x88d   :  { %v1470_v62 = vld [vmem:[%s3761_s13 + $0xd0] sm:$0xff] }
 0x88f   :  { %v2535_v19 = vpop.eup %2534 }
 0x890   :  { %v1177_v20 = vsel %vm553_vm2, %v2535_v19, 0.0 }
 0x891   :  { %v2537_v21 = vpop.eup %2536  ;;  %1178 = vadd.xlane.f32.xlu0 %v1177_v20  ;;  %v1502_v20 = vld [vmem:[%s3761_s13 + $0x1d0] sm:$0xff] }
 0x892   :  { %v1174_v8 = vsel %vm553_vm2, %v2537_v21, 0.0 }
 0x895   :  { %1175 = vadd.xlane.f32.xlu0 %v1174_v8  ;;  %v1499_v8 = vld [vmem:[%s3761_s13 + $0x1b8] sm:$0xff] }
 0x8ab   :  { %1186 = vrot.lane.b32.xlu0 %v3069_v6, %s2634_s25  ;;  %v1317_v6 = vld [vmem:[%s3755_s7 + $0x78] sm:$0xff] }
 0x91a   :  { %v1179_v22 = vpop.xlane.xlu0 %1178 }
 0x91b   :  { %2538 = vrcp.f32 %v1179_v22  ;;  %v1496_v22 = vld [vmem:[%s3761_s13 + $0x1a0] sm:$0xff] }
 0x91e   :  { %v1176_v23 = vpop.xlane.xlu0 %1175 }
 0x91f   :  { %2540 = vrcp.f32 %v1176_v23  ;;  %v1498_v23 = vld [vmem:[%s3761_s13 + $0x1b0] sm:$0xff] }
 0x922   :  { %v1187_v24 = vpop.permute.xlu0 %1186 }
 0x923   :  { %2404 = vmatprep.subr.mxu0 %v1187_v24 }
 0x924   :  { %2405 = vmatpush3.msra.mxu0 %v1187_v24  ;;  %v1493_v24 = vld [vmem:[%s3761_s13 + $0x188] sm:$0xff] }
 0x925   :  { %2406 = vmatprep.subr.mxu0 %v1185_v25 }
 0x926   :  { %2407 = vmatpush3.msra.mxu0 %v1185_v25  ;;  %v1495_v25 = vld [vmem:[%s3761_s13 + $0x198] sm:$0xff] }
 0x927   :  { %2411 = vmatprep.subr.mxu0 %v1317_v6 }
 0x928   :  { %v2539_v26 = vpop.eup %2538 }
 0x929   :  { %v1183_v29 = vmul.f32 %v2539_v26, %v2535_v19  ;;  %v1500_v19 = vld [vmem:[%s3761_s13 + $0x1c0] sm:$0xff] }
 0x92a   :  { %v1492_v26 = vld [vmem:[%s3761_s13 + $0x180] sm:$0xff] }
 0x92c   :  { %v2541_v27 = vpop.eup %2540 }
 0x92d   :  { %v1181_v28 = vmul.f32 %v2541_v27, %v2537_v21  ;;  %v1497_v21 = vld [vmem:[%s3761_s13 + $0x1a8] sm:$0xff]  ;;  %v1494_v27 = vld [vmem:[%s3761_s13 + $0x190] sm:$0xff] }
 0x92f   :  { %2408 = vmatprep.mubr.msk.f32.mxu0 %vm553_vm2, %v1181_v28 }
 0x930   :  { %2409 = vmatmul.mubr.msk.f32.vlgmr.msra.gmra.mxu0 %vm553_vm2, %v1183_v29 }
 0x931   :  { %2412 = vmatpush3.msra.mxu0 %v1317_v6 }
 0x932   :  { %2413 = vmatprep.subr.mxu0 %v1316_v30 }
 0x933   :  { %2414 = vmatpush3.msra.mxu0 %v1316_v30 }
 0x934   :  { %2415 = vmatprep.subr.mxu0 %v1315_v31 }
 0x935   :  { %2416 = vmatpush3.msra.mxu0 %v1315_v31 }
 0x936   :  { %2417 = vmatprep.subr.mxu0 %v1314_v32 }
 0x937   :  { %2418 = vmatpush3.msra.mxu0 %v1314_v32 }
 0x938   :  { %2419 = vmatprep.subr.mxu0 %v1313_v33 }
 0x939   :  { %2420 = vmatpush3.msra.mxu0 %v1313_v33 }
 0x93a   :  { %2421 = vmatprep.subr.mxu0 %v1312_v35 }
 0x93b   :  { %2422 = vmatpush3.msra.mxu0 %v1312_v35 }
 0x93c   :  { %2423 = vmatprep.subr.mxu0 %v1311_v36 }
 0x93d   :  { %2424 = vmatpush3.msra.mxu0 %v1311_v36  ;;  %v1489_v36 = vld [vmem:[%s3761_s13 + $0x168] sm:$0xff] }
 0x93e   :  { %2425 = vmatprep.subr.mxu0 %v1310_v37 }
 0x93f   :  { %2426 = vmatpush3.msra.mxu0 %v1310_v37  ;;  %v1491_v37 = vld [vmem:[%s3761_s13 + $0x178] sm:$0xff] }
 0x940   :  { %2427 = vmatprep.subr.mxu0 %v1309_v38 }
 0x941   :  { %2428 = vmatpush3.msra.mxu0 %v1309_v38  ;;  %v1488_v38 = vld [vmem:[%s3761_s13 + $0x160] sm:$0xff] }
 0x942   :  { %2429 = vmatprep.subr.mxu0 %v1308_v40 }
 0x943   :  { %2430 = vmatpush3.msra.mxu0 %v1308_v40  ;;  %v1490_v40 = vld [vmem:[%s3761_s13 + $0x170] sm:$0xff] }
 0x944   :  { %2431 = vmatprep.subr.mxu0 %v1307_v41 }
 0x945   :  { %2432 = vmatpush3.msra.mxu0 %v1307_v41  ;;  %v1485_v41 = vld [vmem:[%s3761_s13 + $0x148] sm:$0xff] }
 0x946   :  { %2433 = vmatprep.subr.mxu0 %v1306_v42 }
 0x947   :  { %2434 = vmatpush3.msra.mxu0 %v1306_v42  ;;  %v1487_v42 = vld [vmem:[%s3761_s13 + $0x158] sm:$0xff] }
 0x948   :  { %2435 = vmatprep.subr.mxu0 %v1305_v1 }
 0x949   :  { %2436 = vmatpush3.msra.mxu0 %v1305_v1  ;;  %v1484_v1 = vld [vmem:[%s3761_s13 + $0x140] sm:$0xff] }
 0x94a   :  { %2437 = vmatprep.subr.mxu0 %v1304_v43 }
 0x94b   :  { %2438 = vmatpush3.msra.mxu0 %v1304_v43  ;;  %v1486_v43 = vld [vmem:[%s3761_s13 + $0x150] sm:$0xff] }
 0x94c   :  { %2439 = vmatprep.subr.mxu0 %v1303_v44 }
 0x94d   :  { %2440 = vmatpush3.msra.mxu0 %v1303_v44  ;;  %v1481_v44 = vld [vmem:[%s3761_s13 + $0x128] sm:$0xff] }
 0x94e   :  { %2441 = vmatprep.subr.mxu0 %v1302_v57 }
 0x94f   :  { %2442 = vmatpush3.msra.mxu0 %v1302_v57  ;;  %v1483_v57 = vld [vmem:[%s3761_s13 + $0x138] sm:$0xff] }
 0x950   :  { %1607 = vmatprep.subr.mxu0 %v1507_v17  ;;  %v1456_v17 = vld [vmem:[%s3761_s13 + $0x60] sm:$0xff] }
 0x9f0   :  { %v2410_v63 = vpop.f32.mrf.mxu0 }
 0x9f2   :  { %v1262_v2 = vpop.f32.mrf.mxu0 }
 0x9f3   :  { %v2501_v47 = vpack.i.bf16 %v2410_v63, %v1262_v2  ;;  %v1480_v63 = vld [vmem:[%s3761_s13 + $0x120] sm:$0xff]  ;;  %v1482_v2 = vld [vmem:[%s3761_s13 + $0x130] sm:$0xff] }
 0x9f5   :  { %2502 = vrot.lane.b32.xlu0 %v2501_v47, %s2632_s24  ;;  %v1477_v47 = vld [vmem:[%s3761_s13 + $0x108] sm:$0xff] }
 0xa67   :  { %v2503_v56 = vpop.permute.xlu0 %2502 }
 0xa68   :  { %v2505_v60 = vunpack.i.h.bf16 %v2503_v56  ;;  %v2504_v61 = vunpack.i.l.bf16 %v2503_v56  ;;  %v1474_v56 = vld [vmem:[%s3761_s13 + $0xf0] sm:$0xff] }
 0xa6a   :  { %v1300_v7 = vsel %vm1299_vm3, %v1297_v4, %v2504_v61  ;;  %v1301_v9 = vsel %vm1299_vm3, %v1298_v5, %v2505_v60  ;;  %v1471_v60 = vld [vmem:[%s3761_s13 + $0xd8] sm:$0xff]  ;;  %v1468_v61 = vld [vmem:[%s3761_s13 + $0xc0] sm:$0xff]  ;;  %v1465_v4 = vld [vmem:[%s3761_s13 + $0xa8] sm:$0xff] }
 0xa6b   :  { %2443 = vmatprep.mubr.f32.mxu0 %v1300_v7  ;;  %v1467_v5 = vld [vmem:[%s3761_s13 + $0xb8] sm:$0xff]  ;;  %v1464_v7 = vld [vmem:[%s3761_s13 + $0xa0] sm:$0xff] }
 0xa6c   :  { %2444 = vmatmul.mubr.f32.vlgmr.msra.gmra.mxu0 %v1301_v9  ;;  %v1466_v9 = vld [vmem:[%s3761_s13 + $0xb0] sm:$0xff] }
 0xa6d   :  { %1671 = vmatprep.mubr.f32.mxu0 %v2631_v0 }
 0xb2c   :  { %v2445_v11 = vpop.f32.mrf.mxu0 }
 0xb2d   :  { %v1394_v12 = vadd.f32 %v2445_v11, %v2869_v39  ;;  %v1504_v39 = vld [vmem:[%s3761_s13 + $0x1e0] sm:$0xff]  ;;  %v1461_v11 = vld [vmem:[%s3761_s13 + $0x88] sm:$0xff] }
 0xb2e   :  { %v1384_v14 = vpop.f32.mrf.mxu0  ;;  %1531 = vmatpush1.msra.mxu1 %v1504_v39  ;;  %v1458_v39 = vld [vmem:[%s3761_s13 + $0x70] sm:$0xff] }
 0xb2f   :  { %v3240_v15 = vadd.f32 %v2154_v45, %v1394_v12  ;;  %v1393_v46 = vadd.f32 %v1384_v14, %v2863_v34  ;;  %v1506_v34 = vld [vmem:[%s3761_s13 + $0x1f0] sm:$0xff]  ;;  %1532 = vmatprep.subr.mxu1 %v1501_v18  ;;  %v1460_v12 = vld [vmem:[%s3761_s13 + $0x80] sm:$0xff]  ;;  %v1455_v18 = vld [vmem:[%s3761_s13 + $0x58] sm:$0xff] }
 0xb30   :  { %1608 = vmatpush1.msra.mxu0 %v1506_v34  ;;  %1533 = vmatpush1.msra.mxu1 %v1500_v19  ;;  %v1462_v14 = vld [vmem:[%s3761_s13 + $0x90] sm:$0xff]  ;;  %v1453_v34 = vld [vmem:[%s3761_s13 + $0x48] sm:$0xff] }
 0xb31   :  { %v3243_v16 = vadd.f32 %v2154_v45, %v1393_v46  ;;  %1408 = vadd.xlane.f32.xlu0 %v3240_v15  ;;  %1609 = vmatprep.subr.mxu0 %v1503_v13  ;;  %v1463_v45 = vld [vmem:[%s3761_s13 + $0x98] sm:$0xff]  ;;  %v1457_v46 = vld [vmem:[%s3761_s13 + $0x68] sm:$0xff]  ;;  %v1452_v13 = vld [vmem:[%s3761_s13 + $0x40] sm:$0xff] }
 0xb32   :  { %1610 = vmatpush1.msra.mxu0 %v1502_v20  ;;  %1534 = vmatprep.subr.mxu1 %v1497_v21  ;;  %v1454_v19 = vld [vmem:[%s3761_s13 + $0x50] sm:$0xff]  ;;  %v1449_v20 = vld [vmem:[%s3761_s13 + $0x28] sm:$0xff]  ;;  %v1451_v21 = vld [vmem:[%s3761_s13 + $0x38] sm:$0xff] }
 0xb33   :  { %1406 = vadd.xlane.f32.xlu1 %v3243_v16  ;;  %1611 = vmatprep.subr.mxu0 %v1499_v8  ;;  %v1448_v8 = vld [vmem:[%s3761_s13 + $0x20] sm:$0xff] }
 0xb34   :  { %1535 = vmatpush1.msra.mxu1 %v1496_v22  ;;  %1612 = vmatpush1.msra.mxu0 %v1498_v23  ;;  %v1450_v22 = vld [vmem:[%s3761_s13 + $0x30] sm:$0xff]  ;;  %v1445_v23 = vld [vmem:[%s3761_s13 + $0x8] sm:$0xff] }
 0xb35   :  { %1536 = vmatprep.subr.mxu1 %v1493_v24  ;;  %1613 = vmatprep.subr.mxu0 %v1495_v25  ;;  %v1447_v24 = vld [vmem:[%s3761_s13 + $0x18] sm:$0xff]  ;;  %v1444_v25 = vld [vmem:[%s3761_s13] sm:$0xff] }
 0xb36   :  { %1537 = vmatpush1.msra.mxu1 %v1492_v26  ;;  %1614 = vmatpush1.msra.mxu0 %v1494_v27  ;;  %v1446_v26 = vld [vmem:[%s3761_s13 + $0x10] sm:$0xff] }
 0xb37   :  { %1538 = vmatprep.subr.mxu1 %v1489_v36  ;;  %1615 = vmatprep.subr.mxu0 %v1491_v37  ;;  %v2155_v36 = vld [vmem:[%s3759_s11] ss:$0 sm:$0xff] }
 0xb38   :  { %1539 = vmatpush1.msra.mxu1 %v1488_v38  ;;  %1616 = vmatpush1.msra.mxu0 %v1490_v40  ;;  %v2156_v38 = vld [vmem:[%s3760_s12] ss:$0 sm:$0xff] }
 0xb39   :  { %1540 = vmatprep.subr.mxu1 %v1485_v41  ;;  %1617 = vmatprep.subr.mxu0 %v1487_v42 }
 0xb3a   :  { %1541 = vmatpush1.msra.mxu1 %v1484_v1  ;;  %1618 = vmatpush1.msra.mxu0 %v1486_v43 }
 0xb3b   :  { %1542 = vmatprep.subr.mxu1 %v1481_v44  ;;  %1619 = vmatprep.subr.mxu0 %v1483_v57  ;;  %v1819_v57 = vld [vmem:[%s3763_s15 + $0x1f8] sm:$0xff] }
 0xb3c   :  { %1543 = vmatpush1.msra.mxu1 %v1480_v63  ;;  %1620 = vmatpush1.msra.mxu0 %v1482_v2  ;;  %v1803_v63 = vld [vmem:[%s3763_s15 + $0x178] sm:$0xff]  ;;  %v1786_v2 = vld [vmem:[%s3763_s15 + $0xf0] sm:$0xff] }
 0xb3d   :  { %1544 = vmatprep.subr.mxu1 %v1477_v47  ;;  %1621 = vmatprep.subr.mxu0 %v1479_v48  ;;  %v1818_v47 = vld [vmem:[%s3763_s15 + $0x1f0] sm:$0xff] }
 0xb3e   :  { %1545 = vmatpush1.msra.mxu1 %v1476_v49  ;;  %1622 = vmatpush1.msra.mxu0 %v1478_v50  ;;  %v1770_v48 = vld [vmem:[%s3763_s15 + $0x70] sm:$0xff]  ;;  %v1785_v50 = vld [vmem:[%s3763_s15 + $0xe8] sm:$0xff] }
 0xb3f   :  { %1546 = vmatprep.subr.mxu1 %v1473_v51  ;;  %1623 = vmatprep.subr.mxu0 %v1475_v54  ;;  %v1802_v49 = vld [vmem:[%s3763_s15 + $0x170] sm:$0xff]  ;;  %v1817_v51 = vld [vmem:[%s3763_s15 + $0x1e8] sm:$0xff] }
 0xb40   :  { %1547 = vmatpush1.msra.mxu1 %v1472_v55  ;;  %1624 = vmatpush1.msra.mxu0 %v1474_v56  ;;  %v1769_v54 = vld [vmem:[%s3763_s15 + $0x68] sm:$0xff]  ;;  %v1784_v56 = vld [vmem:[%s3763_s15 + $0xe0] sm:$0xff] }
 0xb41   :  { %1548 = vmatprep.subr.mxu1 %v1469_v59  ;;  %1625 = vmatprep.subr.mxu0 %v1471_v60  ;;  %v1801_v55 = vld [vmem:[%s3763_s15 + $0x168] sm:$0xff]  ;;  %v1816_v59 = vld [vmem:[%s3763_s15 + $0x1e0] sm:$0xff] }
 0xb42   :  { %1549 = vmatpush1.msra.mxu1 %v1468_v61  ;;  %1626 = vmatpush1.msra.mxu0 %v1470_v62  ;;  %v1768_v60 = vld [vmem:[%s3763_s15 + $0x60] sm:$0xff]  ;;  %v1783_v62 = vld [vmem:[%s3763_s15 + $0xd8] sm:$0xff] }
 0xb43   :  { %1550 = vmatprep.subr.mxu1 %v1465_v4  ;;  %1627 = vmatprep.subr.mxu0 %v1467_v5  ;;  %v1800_v61 = vld [vmem:[%s3763_s15 + $0x160] sm:$0xff]  ;;  %v1815_v4 = vld [vmem:[%s3763_s15 + $0x1d8] sm:$0xff] }
 0xb44   :  { %1551 = vmatpush1.msra.mxu1 %v1464_v7  ;;  %1628 = vmatpush1.msra.mxu0 %v1466_v9  ;;  %v1767_v5 = vld [vmem:[%s3763_s15 + $0x58] sm:$0xff]  ;;  %v1782_v9 = vld [vmem:[%s3763_s15 + $0xd0] sm:$0xff] }
 0xb45   :  { %1552 = vmatprep.subr.mxu1 %v1461_v11  ;;  %1629 = vmatprep.subr.mxu0 %v1463_v45  ;;  %v1799_v7 = vld [vmem:[%s3763_s15 + $0x158] sm:$0xff]  ;;  %v1814_v11 = vld [vmem:[%s3763_s15 + $0x1d0] sm:$0xff] }
 0xb46   :  { %1553 = vmatpush1.msra.mxu1 %v1460_v12  ;;  %1630 = vmatpush1.msra.mxu0 %v1462_v14  ;;  %v1766_v45 = vld [vmem:[%s3763_s15 + $0x50] sm:$0xff]  ;;  %v1781_v14 = vld [vmem:[%s3763_s15 + $0xc8] sm:$0xff] }
 0xb47   :  { %1554 = vmatprep.subr.mxu1 %v1457_v46  ;;  %1631 = vmatprep.subr.mxu0 %v1459_v10  ;;  %v1798_v12 = vld [vmem:[%s3763_s15 + $0x150] sm:$0xff]  ;;  %v1813_v46 = vld [vmem:[%s3763_s15 + $0x1c8] sm:$0xff] }
 0xb48   :  { %1555 = vmatpush1.msra.mxu1 %v1456_v17  ;;  %1632 = vmatpush1.msra.mxu0 %v1458_v39  ;;  %v1765_v10 = vld [vmem:[%s3763_s15 + $0x48] sm:$0xff]  ;;  %v1780_v39 = vld [vmem:[%s3763_s15 + $0xc0] sm:$0xff] }
 0xb49   :  { %1556 = vmatprep.subr.mxu1 %v1453_v34  ;;  %1633 = vmatprep.subr.mxu0 %v1455_v18  ;;  %v1797_v17 = vld [vmem:[%s3763_s15 + $0x148] sm:$0xff]  ;;  %v1812_v34 = vld [vmem:[%s3763_s15 + $0x1c0] sm:$0xff] }
 0xb4a   :  { %1557 = vmatpush1.msra.mxu1 %v1452_v13  ;;  %1634 = vmatpush1.msra.mxu0 %v1454_v19  ;;  %v1764_v18 = vld [vmem:[%s3763_s15 + $0x40] sm:$0xff]  ;;  %v1779_v19 = vld [vmem:[%s3763_s15 + $0xb8] sm:$0xff] }
 0xb4b   :  { %1558 = vmatprep.subr.mxu1 %v1449_v20  ;;  %1635 = vmatprep.subr.mxu0 %v1451_v21  ;;  %v1796_v13 = vld [vmem:[%s3763_s15 + $0x140] sm:$0xff]  ;;  %v1811_v20 = vld [vmem:[%s3763_s15 + $0x1b8] sm:$0xff] }
 0xb4c   :  { %1559 = vmatpush1.msra.mxu1 %v1448_v8  ;;  %1636 = vmatpush1.msra.mxu0 %v1450_v22  ;;  %v1763_v21 = vld [vmem:[%s3763_s15 + $0x38] sm:$0xff]  ;;  %v1778_v22 = vld [vmem:[%s3763_s15 + $0xb0] sm:$0xff] }
 0xb4d   :  { %1560 = vmatprep.subr.mxu1 %v1445_v23  ;;  %1637 = vmatprep.subr.mxu0 %v1447_v24  ;;  %v1795_v8 = vld [vmem:[%s3763_s15 + $0x138] sm:$0xff]  ;;  %v1810_v23 = vld [vmem:[%s3763_s15 + $0x1b0] sm:$0xff] }
 0xb4e   :  { %1561 = vmatpush1.msra.mxu1 %v1444_v25  ;;  %1638 = vmatpush1.msra.mxu0 %v1446_v26  ;;  %v1762_v24 = vld [vmem:[%s3763_s15 + $0x30] sm:$0xff]  ;;  %v1777_v26 = vld [vmem:[%s3763_s15 + $0xa8] sm:$0xff] }
 0xb4f   :  { %2265 = vmatprep.subr.mxu0 %v1819_v57  ;;  %v1794_v25 = vld [vmem:[%s3763_s15 + $0x130] sm:$0xff]  ;;  %v1757_v57 = vld [vmem:[%s3763_s15 + $0x8] sm:$0xff] }
 0xbba   :  { %v1409_v28 = vpop.xlane.xlu0 %1408 }
 0xbbb   :  { %v1411_v6 = vmul.f32 0.0078125, %v1409_v28 }
 0xbbc   :  { %v1407_v29 = vpop.xlane.xlu1 %1406 }
 0xbbd   :  { %v1410_v30 = vmul.f32 0.0078125, %v1407_v29  ;;  %v3299_v32 = vsub.f32 %v3240_v15, %v1411_v6 }
 0xbbf   :  { %v3296_v31 = vsub.f32 %v3243_v16, %v1410_v30  ;;  %v1415_v35 = vmul.f32 %v3299_v32, %v3299_v32 }
 0xbc1   :  { %v1414_v33 = vmul.f32 %v3296_v31, %v3296_v31 }
 0xbc3   :  { %1416 = vadd.xlane.f32.xlu0 %v1414_v33 }
 0xbc7   :  { %1418 = vadd.xlane.f32.xlu0 %v1415_v35 }
 0xc4c   :  { %v1417_v27 = vpop.xlane.xlu0 %1416 }
 0xc4d   :  { %v1420_v28 = vmul.f32 0.0078125, %v1417_v27  ;;  %v1809_v27 = vld [vmem:[%s3763_s15 + $0x1a8] sm:$0xff] }
 0xc4f   :  { %v1422_v29 = vadd.f32 1e-05, %v1420_v28  ;;  %v1761_v28 = vld [vmem:[%s3763_s15 + $0x28] sm:$0xff] }
 0xc50   :  { %v1419_v6 = vpop.xlane.xlu0 %1418 }
 0xc51   :  { %2542 = vrsqrt.f32 %v1422_v29  ;;  %v1421_v30 = vmul.f32 0.0078125, %v1419_v6  ;;  %v1793_v29 = vld [vmem:[%s3763_s15 + $0x128] sm:$0xff]  ;;  %v1776_v6 = vld [vmem:[%s3763_s15 + $0xa0] sm:$0xff] }
 0xc53   :  { %v1423_v33 = vadd.f32 1e-05, %v1421_v30  ;;  %v1808_v30 = vld [vmem:[%s3763_s15 + $0x1a0] sm:$0xff] }
 0xc55   :  { %2544 = vrsqrt.f32 %v1423_v33  ;;  %v1760_v33 = vld [vmem:[%s3763_s15 + $0x20] sm:$0xff] }
 0xc5e   :  { %v2543_v35 = vpop.eup %2542 }
 0xc5f   :  { %v1426_v37 = vmul.f32 %v2543_v35, %v3296_v31  ;;  %v1787_v31 = vld [vmem:[%s3763_s15 + $0xf8] sm:$0xff]  ;;  %v1792_v35 = vld [vmem:[%s3763_s15 + $0x120] sm:$0xff] }
 0xc60   :  { %2227 = vmatprep.subr.mxu1 %v1787_v31  ;;  %v1805_v31 = vld [vmem:[%s3763_s15 + $0x188] sm:$0xff] }
 0xc61   :  { %v1434_v40 = vmul.f32 %v2155_v36, %v1426_v37  ;;  %v1807_v37 = vld [vmem:[%s3763_s15 + $0x198] sm:$0xff] }
 0xc62   :  { %v2545_v41 = vpop.eup %2544 }
 0xc63   :  { %v1442_v42 = vadd.f32 %v2156_v38, %v1434_v40  ;;  %v1427_v1 = vmul.f32 %v2545_v41, %v3299_v32  ;;  %v1771_v32 = vld [vmem:[%s3763_s15 + $0x78] sm:$0xff]  ;;  %v1774_v41 = vld [vmem:[%s3763_s15 + $0x90] sm:$0xff] }
 0xc64   :  { %v1791_v40 = vld [vmem:[%s3763_s15 + $0x118] sm:$0xff] }
 0xc65   :  { %1595 = vmatmul.mubr.f32.vlgmr.msra.gmra.mxu1 %v1442_v42  ;;  %1672 = vmatmul.mubr.f32.vlgmr.msra.gmra.mxu0 %v1442_v42  ;;  %v1435_v43 = vmul.f32 %v2155_v36, %v1427_v1  ;;  %v1775_v36 = vld [vmem:[%s3763_s15 + $0x98] sm:$0xff]  ;;  %v1806_v42 = vld [vmem:[%s3763_s15 + $0x190] sm:$0xff] }
 0xc66   :  { %1600 = vmatprep.mubr.f32.mxu1 %v2631_v0  ;;  %1677 = vmatprep.mubr.f32.mxu0 %v2631_v0  ;;  %v1758_v1 = vld [vmem:[%s3763_s15 + $0x10] sm:$0xff] }
 0xc67   :  { %v1443_v44 = vadd.f32 %v2156_v38, %v1435_v43  ;;  %2228 = vmatpush3.msra.mxu1 %v1771_v32  ;;  %2266 = vmatpush3.msra.mxu0 %v1803_v63  ;;  %v1759_v38 = vld [vmem:[%s3763_s15 + $0x18] sm:$0xff]  ;;  %v1790_v43 = vld [vmem:[%s3763_s15 + $0x110] sm:$0xff]  ;;  %v1789_v32 = vld [vmem:[%s3763_s15 + $0x108] sm:$0xff] }
 0xc68   :  { %2229 = vmatprep.subr.mxu1 %v1786_v2  ;;  %2267 = vmatprep.subr.mxu0 %v1818_v47  ;;  %v1772_v63 = vld [vmem:[%s3763_s15 + $0x80] sm:$0xff] }
 0xc69   :  { %1601 = vmatmul.mubr.f32.gmra.mxu1 %v1443_v44  ;;  %1678 = vmatmul.mubr.f32.gmra.mxu0 %v1443_v44  ;;  %v1773_v44 = vld [vmem:[%s3763_s15 + $0x88] sm:$0xff]  ;;  %v1804_v2 = vld [vmem:[%s3763_s15 + $0x180] sm:$0xff] }
 0xc6a   :  { %2230 = vmatpush3.msra.mxu1 %v1770_v48  ;;  %2268 = vmatpush3.msra.mxu0 %v1802_v49  ;;  %v1756_v47 = vld [vmem:[%s3763_s15] sm:$0xff] }
 0xc6b   :  { %2231 = vmatprep.subr.mxu1 %v1785_v50  ;;  %2269 = vmatprep.subr.mxu0 %v1817_v51  ;;  %v1788_v48 = vld [vmem:[%s3763_s15 + $0x100] sm:$0xff]  ;;  %v1524_v50 = vsub.s32 3, %v3035_v52 }
 0xc6c   :  { %2232 = vmatpush3.msra.mxu1 %v1769_v54  ;;  %2270 = vmatpush3.msra.mxu0 %v1801_v55  ;;  %v1508_v49 = vld [vmem:[%s3762_s14] sm:$0xf] }
 0xc6d   :  { %2233 = vmatprep.subr.mxu1 %v1784_v56  ;;  %2271 = vmatprep.subr.mxu0 %v1816_v59  ;;  %v1513_v51 = vrot.slane %v1508_v49, %v294_v53  ;;  %v1521_v54 = vrot.slane %v1508_v49, %v302_v3  ;;  %v1517_v55 = vrot.slane %v1508_v49, %v298_v58 }
 0xc6e   :  { %2234 = vmatpush3.msra.mxu1 %v1768_v60  ;;  %2272 = vmatpush3.msra.mxu0 %v1800_v61  ;;  %v1525_v56 = vrot.slane %v1508_v49, %v1524_v50 }
 0xc6f   :  { %2235 = vmatprep.subr.mxu1 %v1783_v62  ;;  %2273 = vmatprep.subr.mxu0 %v1815_v4 }
 0xc70   :  { %2236 = vmatpush3.msra.mxu1 %v1767_v5  ;;  %2274 = vmatpush3.msra.mxu0 %v1799_v7 }
 0xc71   :  { %2237 = vmatprep.subr.mxu1 %v1782_v9  ;;  %2275 = vmatprep.subr.mxu0 %v1814_v11 }
 0xc72   :  { %2238 = vmatpush3.msra.mxu1 %v1766_v45  ;;  %2276 = vmatpush3.msra.mxu0 %v1798_v12 }
 0xc73   :  { %2239 = vmatprep.subr.mxu1 %v1781_v14  ;;  %2277 = vmatprep.subr.mxu0 %v1813_v46 }
 0xc74   :  { %2240 = vmatpush3.msra.mxu1 %v1765_v10  ;;  %2278 = vmatpush3.msra.mxu0 %v1797_v17 }
 0xc75   :  { %2241 = vmatprep.subr.mxu1 %v1780_v39  ;;  %2279 = vmatprep.subr.mxu0 %v1812_v34 }
 0xc76   :  { %2242 = vmatpush3.msra.mxu1 %v1764_v18  ;;  %2280 = vmatpush3.msra.mxu0 %v1796_v13 }
 0xc77   :  { %2243 = vmatprep.subr.mxu1 %v1779_v19  ;;  %2281 = vmatprep.subr.mxu0 %v1811_v20 }
 0xc78   :  { %2244 = vmatpush3.msra.mxu1 %v1763_v21  ;;  %2282 = vmatpush3.msra.mxu0 %v1795_v8 }
 0xc79   :  { %2245 = vmatprep.subr.mxu1 %v1778_v22  ;;  %2283 = vmatprep.subr.mxu0 %v1810_v23 }
 0xc7a   :  { %2246 = vmatpush3.msra.mxu1 %v1762_v24  ;;  %2284 = vmatpush3.msra.mxu0 %v1794_v25 }
 0xc7b   :  { %2247 = vmatprep.subr.mxu1 %v1777_v26  ;;  %2285 = vmatprep.subr.mxu0 %v1809_v27 }
 0xc7c   :  { %2248 = vmatpush3.msra.mxu1 %v1761_v28  ;;  %2286 = vmatpush3.msra.mxu0 %v1793_v29 }
 0xc7d   :  { %2249 = vmatprep.subr.mxu1 %v1776_v6  ;;  %2287 = vmatprep.subr.mxu0 %v1808_v30 }
 0xc7e   :  { %2250 = vmatpush3.msra.mxu1 %v1760_v33  ;;  %2288 = vmatpush3.msra.mxu0 %v1792_v35 }
 0xc7f   :  { %2251 = vmatprep.subr.mxu1 %v1775_v36  ;;  %2289 = vmatprep.subr.mxu0 %v1807_v37 }
 0xc80   :  { %2252 = vmatpush3.msra.mxu1 %v1759_v38  ;;  %2290 = vmatpush3.msra.mxu0 %v1791_v40 }
 0xc81   :  { %2253 = vmatprep.subr.mxu1 %v1774_v41  ;;  %2291 = vmatprep.subr.mxu0 %v1806_v42 }
 0xc82   :  { %2254 = vmatpush3.msra.mxu1 %v1758_v1  ;;  %2292 = vmatpush3.msra.mxu0 %v1790_v43 }
 0xc83   :  { %2255 = vmatprep.subr.mxu1 %v1773_v44  ;;  %2293 = vmatprep.subr.mxu0 %v1805_v31 }
 0xc84   :  { %2256 = vmatpush3.msra.mxu1 %v1757_v57  ;;  %2294 = vmatpush3.msra.mxu0 %v1789_v32 }
 0xc85   :  { %2257 = vmatprep.subr.mxu1 %v1772_v63  ;;  %2295 = vmatprep.subr.mxu0 %v1804_v2 }
 0xc86   :  { %2258 = vmatpush3.msra.mxu1 %v1756_v47  ;;  %2296 = vmatpush3.msra.mxu0 %v1788_v48 }
 0xc87   :  { %2446 = vmatprep.subr.mxu1 %v2631_v0 }
 0xd25   :  { %v1596_v59 = vpop.f32.mrf.mxu1  ;;  %v1673_v60 = vpop.f32.mrf.mxu0 }
 0xd26   :  { %v3662_v61 = vadd.f32 %v1596_v59, %v1513_v51  ;;  %v3664_v62 = vadd.f32 %v1673_v60, %v1521_v54 }
 0xd27   :  { %v1598_v4 = vpop.f32.mrf.mxu1  ;;  %v1675_v5 = vpop.f32.mrf.mxu0 }
 0xd28   :  { %v1684_v7 = vmul.f32 %v3662_v61, %v3662_v61  ;;  %v1686_v53 = vmul.f32 %v3664_v62, %v3664_v62  ;;  %v3670_v9 = vadd.f32 %v1598_v4, %v1517_v55  ;;  %v3672_v3 = vadd.f32 %v1675_v5, %v1525_v56 }
 0xd29   :  { %v1602_v52 = vpop.f32.mrf.mxu1  ;;  %v1679_v58 = vpop.f32.mrf.mxu0 }
 0xd2a   :  { %v1692_v11 = vmul.f32 %v1684_v7, %v3662_v61  ;;  %v1694_v45 = vmul.f32 %v1686_v53, %v3664_v62  ;;  %v1685_v12 = vmul.f32 %v3670_v9, %v3670_v9  ;;  %v1687_v14 = vmul.f32 %v3672_v3, %v3672_v3 }
 0xd2b   :  { %v3680_v46 = vadd.f32 %v1602_v52, %v1513_v51  ;;  %v3682_v10 = vadd.f32 %v1679_v58, %v1521_v54  ;;  %v1604_v17 = vpop.f32.mrf.mxu1  ;;  %v1681_v39 = vpop.f32.mrf.mxu0 }
 0xd2c   :  { %v1700_v34 = vmul.f32 0.044715, %v1692_v11  ;;  %v1702_v18 = vmul.f32 0.044715, %v1694_v45  ;;  %v1693_v13 = vmul.f32 %v1685_v12, %v3670_v9  ;;  %v1695_v19 = vmul.f32 %v1687_v14, %v3672_v3 }
 0xd2d   :  { %v1688_v20 = vmul.f32 %v3680_v46, %v3680_v46  ;;  %v1690_v21 = vmul.f32 %v3682_v10, %v3682_v10  ;;  %v3690_v8 = vadd.f32 %v1604_v17, %v1517_v55  ;;  %v3692_v22 = vadd.f32 %v1681_v39, %v1525_v56 }
 0xd2e   :  { %v1708_v23 = vadd.f32 %v1700_v34, %v3662_v61  ;;  %v1710_v24 = vadd.f32 %v1702_v18, %v3664_v62  ;;  %v1701_v25 = vmul.f32 0.044715, %v1693_v13  ;;  %v1703_v26 = vmul.f32 0.044715, %v1695_v19  ;;  %v2017_v19 = vld [vmem:[#allocation2 + $0x78] sm:$0xff] }
 0xd2f   :  { %v1696_v27 = vmul.f32 %v1688_v20, %v3680_v46  ;;  %v1698_v28 = vmul.f32 %v1690_v21, %v3682_v10  ;;  %v1689_v29 = vmul.f32 %v3690_v8, %v3690_v8  ;;  %v1691_v6 = vmul.f32 %v3692_v22, %v3692_v22 }
 0xd30   :  { %v1716_v30 = vmul.f32 0.7978846, %v1708_v23  ;;  %v1718_v33 = vmul.f32 0.7978846, %v1710_v24  ;;  %v1709_v35 = vadd.f32 %v1701_v25, %v3670_v9  ;;  %v1711_v36 = vadd.f32 %v1703_v26, %v3672_v3 }
 0xd31   :  { %v1704_v37 = vmul.f32 0.044715, %v1696_v27  ;;  %v1706_v38 = vmul.f32 0.044715, %v1698_v28  ;;  %v1697_v40 = vmul.f32 %v1689_v29, %v3690_v8  ;;  %v1699_v41 = vmul.f32 %v1691_v6, %v3692_v22  ;;  %v2016_v27 = vld [vmem:[#allocation2 + $0x70] sm:$0xff]  ;;  %v2015_v28 = vld [vmem:[#allocation2 + $0x68] sm:$0xff] }
 0xd32   :  { %2546 = vtanh.f32 %v1716_v30  ;;  %v1717_v42 = vmul.f32 0.7978846, %v1709_v35  ;;  %v1719_v1 = vmul.f32 0.7978846, %v1711_v36  ;;  %v2010_v29 = vld [vmem:[#allocation2 + $0x40] sm:$0xff]  ;;  %v2009_v6 = vld [vmem:[#allocation2 + $0x38] sm:$0xff] }
 0xd33   :  { %2548 = vtanh.f32 %v1718_v33  ;;  %v1712_v43 = vadd.f32 %v1704_v37, %v3680_v46  ;;  %v1714_v44 = vadd.f32 %v1706_v38, %v3682_v10  ;;  %v1705_v31 = vmul.f32 0.044715, %v1697_v40  ;;  %v2008_v30 = vld [vmem:[#allocation2 + $0x30] sm:$0xff]  ;;  %v2007_v33 = vld [vmem:[#allocation2 + $0x28] sm:$0xff]  ;;  %v2006_v35 = vld [vmem:[#allocation2 + $0x20] sm:$0xff] }
 0xd34   :  { %2550 = vtanh.f32 %v1717_v42  ;;  %v1707_v57 = vmul.f32 0.044715, %v1699_v41  ;;  %v2005_v36 = vld [vmem:[#allocation2 + $0x18] sm:$0xff]  ;;  %v2004_v37 = vld [vmem:[#allocation2 + $0x10] sm:$0xff]  ;;  %v2003_v38 = vld [vmem:[#allocation2 + $0x8] sm:$0xff] }
 0xd35   :  { %2552 = vtanh.f32 %v1719_v1  ;;  %v1720_v32 = vmul.f32 0.7978846, %v1712_v43  ;;  %v1722_v63 = vmul.f32 0.7978846, %v1714_v44  ;;  %v1713_v2 = vadd.f32 %v1705_v31, %v3690_v8  ;;  %v2002_v40 = vld [vmem:[#allocation2] sm:$0xff] }
 0xd36   :  { %v1715_v47 = vadd.f32 %v1707_v57, %v3692_v22 }
 0xd37   :  { %2554 = vtanh.f32 %v1720_v32  ;;  %v1721_v48 = vmul.f32 0.7978846, %v1713_v2  ;;  %v2157_v2 = vld [vmem:[%s3764_s16] ss:$0 sm:$0xff]  ;;  %s2636_s16 = smov [#allocation6]  }
 0xd38   :  { %2556 = vtanh.f32 %v1722_v63  ;;  %v1723_v49 = vmul.f32 0.7978846, %v1715_v47  ;;  %s2112_s22 = sshll.u32 %s2636_s16, 4  ;;  %s2113_s22 = int_to_ptr.vmem [resolvable:$true] %s2112_s22 }
 0xd39   :  { %2558 = vtanh.f32 %v1721_v48  ;;  %s2582_s23 = scalar_lea.vmem %s2113_s22, 32  ;;  %p2587_p6 = scmp.lt.s32.totalorder %s2113_s22, %s2113_s22 }
 0xd3a   :  { %2560 = vtanh.f32 %v1723_v49  ;;  %p2583_p5 = scmp.ne.s32.totalorder %s2113_s22, %s2582_s23  ;;  %p2588_p7 = scmp.lt.s32.totalorder %s2582_s23, %s2582_s23 }
 0xd3c   :  { %p2589_p8 = por %p2588_p7, %p2587_p6 }
 0xd3e   :  { %p2590_p9 = pnand %p2589_p8, %p2583_p5 }
 0xd3f   :  { %v2547_v50 = vpop.eup %2546 }
 0xd40   :  { %v2549_v51 = vpop.eup %2548  ;;  %v1732_v54 = vadd.f32 1.0, %v2547_v50 }
 0xd41   :  { %v2551_v55 = vpop.eup %2550  ;;  %v1734_v56 = vadd.f32 1.0, %v2549_v51 }
 0xd42   :  { %v2553_v59 = vpop.eup %2552  ;;  %v1733_v60 = vadd.f32 1.0, %v2551_v55  ;;  %v1740_v4 = vmul.f32 0.5, %v1732_v54 }
 0xd43   :  { %v1735_v5 = vadd.f32 1.0, %v2553_v59  ;;  %v1742_v53 = vmul.f32 0.5, %v1734_v56 }
 0xd44   :  { %v2555_v7 = vpop.eup %2554  ;;  %v1741_v52 = vmul.f32 0.5, %v1733_v60  ;;  %v1748_v34 = vmul.f32 %v1740_v4, %v3662_v61 }
 0xd45   :  { %v2557_v58 = vpop.eup %2556  ;;  %v1743_v11 = vmul.f32 0.5, %v1735_v5  ;;  %v1736_v45 = vadd.f32 1.0, %v2555_v7  ;;  %v1750_v20 = vmul.f32 %v1742_v53, %v3664_v62 }
 0xd46   :  { %v2559_v12 = vpop.eup %2558  ;;  %v1749_v14 = vmul.f32 %v1741_v52, %v3670_v9  ;;  %v1738_v17 = vadd.f32 1.0, %v2557_v58 }
 0xd47   :  { %v2561_v39 = vpop.eup %2560  ;;  %v1751_v18 = vmul.f32 %v1743_v11, %v3672_v3  ;;  %v1737_v13 = vadd.f32 1.0, %v2559_v12  ;;  %v1744_v23 = vmul.f32 0.5, %v1736_v45 }
 0xd48   :  { %1884 = vmatprep.mubr.f32.mxu1 %v1749_v14  ;;  %v1739_v21 = vadd.f32 1.0, %v2561_v39  ;;  %v1746_v25 = vmul.f32 0.5, %v1738_v17 }
 0xd49   :  { %1959 = vmatprep.mubr.f32.mxu0 %v1751_v18  ;;  %1885 = vmatmul.mubr.f32.vlgmr.msra.gmra.mxu1 %v1748_v34  ;;  %v1745_v24 = vmul.f32 0.5, %v1737_v13  ;;  %v1752_v3 = vmul.f32 %v1744_v23, %v3680_v46  ;;  %v2012_v46 = vld [vmem:[#allocation2 + $0x50] sm:$0xff] }
 0xd4a   :  { %1960 = vmatmul.mubr.f32.vlgmr.msra.gmra.mxu0 %v1750_v20  ;;  %v1747_v26 = vmul.f32 0.5, %v1739_v21  ;;  %2447 = vmatpush3.msra.mxu1 %v2017_v19  ;;  %v1754_v62 = vmul.f32 %v1746_v25, %v3682_v10  ;;  %v2011_v10 = vld [vmem:[#allocation2 + $0x48] sm:$0xff] }
 0xd4b   :  { %v1753_v9 = vmul.f32 %v1745_v24, %v3690_v8  ;;  %2448 = vmatprep.subr.mxu1 %v2631_v0  ;;  %v2014_v8 = vld [vmem:[#allocation2 + $0x60] sm:$0xff] }
 0xd4c   :  { %v1755_v61 = vmul.f32 %v1747_v26, %v3692_v22  ;;  %2449 = vmatpush3.msra.mxu1 %v2016_v27  ;;  %v2013_v22 = vld [vmem:[#allocation2 + $0x58] sm:$0xff] }
 0xd4d   :  { %1889 = vmatprep.mubr.f32.mxu1 %v1753_v9  ;;  %2450 = vmatprep.subr.mxu1 %v2631_v0 }
 0xd4e   :  { %1964 = vmatprep.mubr.f32.mxu0 %v1755_v61  ;;  %1890 = vmatmul.mubr.f32.gmra.mxu1 %v1752_v3 }
 0xd4f   :  { %1965 = vmatmul.mubr.f32.gmra.mxu0 %v1754_v62  ;;  %2451 = vmatpush3.msra.mxu1 %v2015_v28 }
 0xd50   :  { %2452 = vmatprep.subr.mxu1 %v2631_v0  ;;  %2478 = vmatprep.mubr.msk.f32.mxu1 %vm2635_vm4, %v2631_v0 }
 0xd51   :  { %2453 = vmatpush3.msra.mxu1 %v2014_v8 }
 0xd52   :  { %2454 = vmatprep.subr.mxu1 %v2631_v0 }
 0xd53   :  { %2455 = vmatpush3.msra.mxu1 %v2013_v22 }
 0xd54   :  { %2456 = vmatprep.subr.mxu1 %v2631_v0 }
 0xd55   :  { %2457 = vmatpush3.msra.mxu1 %v2012_v46 }
 0xd56   :  { %2458 = vmatprep.subr.mxu1 %v2631_v0 }
 0xd57   :  { %2459 = vmatpush3.msra.mxu1 %v2011_v10 }
 0xd58   :  { %2460 = vmatprep.subr.mxu1 %v2631_v0 }
 0xd59   :  { %2461 = vmatpush3.msra.mxu1 %v2010_v29 }
 0xd5a   :  { %2462 = vmatprep.subr.mxu1 %v2631_v0 }
 0xd5b   :  { %2463 = vmatpush3.msra.mxu1 %v2009_v6 }
 0xd5c   :  { %2464 = vmatprep.subr.mxu1 %v2631_v0 }
 0xd5d   :  { %2465 = vmatpush3.msra.mxu1 %v2008_v30 }
 0xd5e   :  { %2466 = vmatprep.subr.mxu1 %v2631_v0 }
 0xd5f   :  { %2467 = vmatpush3.msra.mxu1 %v2007_v33 }
 0xd60   :  { %2468 = vmatprep.subr.mxu1 %v2631_v0 }
 0xd61   :  { %2469 = vmatpush3.msra.mxu1 %v2006_v35 }
 0xd62   :  { %2470 = vmatprep.subr.mxu1 %v2631_v0 }
 0xd63   :  { %2471 = vmatpush3.msra.mxu1 %v2005_v36 }
 0xd64   :  { %2472 = vmatprep.subr.mxu1 %v2631_v0 }
 0xd65   :  { %2473 = vmatpush3.msra.mxu1 %v2004_v37 }
 0xd66   :  { %2474 = vmatprep.subr.mxu1 %v2631_v0 }
 0xd67   :  { %2475 = vmatpush3.msra.mxu1 %v2003_v38 }
 0xd68   :  { %2476 = vmatprep.subr.mxu1 %v2631_v0 }
 0xd69   :  { %2477 = vmatpush3.msra.mxu1 %v2002_v40 }
 0xe09   :  { %v2259_v41 = vpop.f32.mrf.mxu1 }
 0xe0a   :  { %v2297_v42 = vpop.f32.mrf.mxu0 }
 0xe0b   :  { %v2260_v1 = vpop.f32.mrf.mxu1 }
 0xe0c   :  { %v2261_v43 = vadd.f32 %v2260_v1, %v2259_v41  ;;  %v2298_v44 = vpop.f32.mrf.mxu0 }
 0xe0d   :  { %v2299_v31 = vadd.f32 %v2298_v44, %v2297_v42 }
 0xe0e   :  { %v2262_v57 = vpop.f32.mrf.mxu1 }
 0xe0f   :  { %v1962_v32 = vadd.f32 %v2299_v31, %v2261_v43  ;;  %v2300_v63 = vpop.f32.mrf.mxu0 }
 0xe10   :  { %v2263_v47 = vpop.f32.mrf.mxu1 }
 0xe11   :  { %v1970_v48 = vadd.f32 %v1962_v32, %v3243_v16  ;;  %v2264_v49 = vadd.f32 %v2263_v47, %v2262_v57  ;;  %v2301_v50 = vpop.f32.mrf.mxu0 }
 0xe12   :  { %v2302_v0 = vadd.f32 %v2301_v50, %v2300_v63 }
 0xe13   :  { %v1979_v51 = vadd.f32 %v2157_v2, %v1970_v48 }
 0xe14   :  { %v1967_v54 = vadd.f32 %v2302_v0, %v2264_v49 }
 0xe15   :  { %v1981_v55 = vrot.slane %v1979_v51, 4 }
 0xe16   :  { %v1971_v56 = vadd.f32 %v1967_v54, %v3240_v15 }
 0xe17   :  { %v1982_v59 = vadd.f32 %v1981_v55, %v1979_v51 }
 0xe18   :  { %v1980_v60 = vadd.f32 %v2157_v2, %v1971_v56 }
 0xe19   :  { %v1983_v4 = vrot.slane %v1982_v59, 2 }
 0xe1a   :  { %v1987_v5 = vrot.slane %v1980_v60, 4 }
 0xe1b   :  { %v1984_v7 = vadd.f32 %v1983_v4, %v1982_v59 }
 0xe1c   :  { %v1988_v53 = vadd.f32 %v1987_v5, %v1980_v60 }
 0xe1d   :  { %v1985_v52 = vrot.slane %v1984_v7, 1 }
 0xe1e   :  { %v1989_v58 = vrot.slane %v1988_v53, 2 }
 0xe1f   :  { %v1986_v12 = vadd.f32 %v1985_v52, %v1984_v7 }
 0xe20   :  { %v1990_v11 = vadd.f32 %v1989_v58, %v1988_v53 }
 0xe21   :  { %v1994_v14 = vmul.f32 0.125, %v1986_v12 }
 0xe22   :  { %v1991_v45 = vrot.slane %v1990_v11, 1 }
 0xe24   :  { %v1992_v16 = vadd.f32 %v1991_v45, %v1990_v11 }
 0xe26   :  { %v1995_v17 = vmul.f32 0.125, %v1992_v16 }
 0xe28   :  { %v1999_v39 = vsel %vm1998_vm5, %v1995_v17, %v1994_v14 }
 0xe29   :  { %2479 = vmatmul.mubr.f32.vlgmr.msra.gmra.mxu1 %v1999_v39  ;;  %2001 = vst [vmem:[#allocation6] sm:$0x3] %v1999_v39 }
 0xe2a   :  { %2593 = shalt.err (!%p2590_p9)
}
 0xe2b   :  { %2115 = dma.vmem_to_hbm [thread:$0]  %s2113_s22, 32, %s3768_s20, [#allocation7]   ;;  %v2158_v15 = vld [vmem:[%s3766_s18] ss:$0 sm:$0xff] }
 0xe2c   :  { %s2637_s28 = smov [#allocation5]  }
 0xe2d   :  { %s2102_s10 = sshll.u32 %s2637_s28, 4  ;;  %s2103_s10 = int_to_ptr.vmem [resolvable:$true] %s2102_s10 }
 0xe2e   :  { %s2602_s26 = scalar_lea.vmem %s2103_s10, 32  ;;  %p2607_p11 = scmp.lt.s32.totalorder %s2103_s10, %s2103_s10 }
 0xe2f   :  { %p2603_p10 = scmp.ne.s32.totalorder %s2103_s10, %s2602_s26  ;;  %p2608_p12 = scmp.lt.s32.totalorder %s2602_s26, %s2602_s26 }
 0xe31   :  { %p2609_p13 = por %p2608_p12, %p2607_p11 }
 0xe33   :  { %p2610_p0 = pnand %p2609_p13, %p2603_p10 }
 0xee9   :  { %v2091_v34 = vpop.f32.mrf.mxu1 }
 0xeea   :  { %v2092_v18 = vadd.f32 %v2158_v15, %v2091_v34 }
 0xeeb   :  { %v2480_v13 = vpop.f32.mrf.mxu1 }
 0xeec   :  { %2095 = vst [vmem:[#allocation5] sm:$0x3] %v2092_v18 }
 0xeed   :  { %2613 = shalt.err (!%p2610_p0)
}
 0xeee   :  { %2105 = dma.vmem_to_hbm [thread:$0]  %s2103_s10, 32, %s3767_s19, [#allocation4]  }
 0xeef   :  { %2624 = dma.done.wait [#allocation4], 32  }
 0xef0   :  { %2625 = vsyncadd [#allocation4], 4294967264 }
 0xef1   :  { %2626 = dma.done.wait [#allocation7], 32  }
 0xef2   :  { %2627 = vsyncadd [#allocation7], 4294967264 }
 0xef3   :  { %2122 = vsyncpa [#allocation3], 1 }
 0xef4   :  { %2123 = vsyncpa [#allocation4], 1 }
 0xef5   :  { %2124 = vsyncpa [#allocation7], 1 }

</bundles_post_ra>
